<compile_context>
chip_gen: v7x
topology: tpu7x:2x2x1
jax: 0.10.0
libtpu: 0.0.40
codegen_flags: <defaults>
</compile_context>

<pallas_src>
import functools

import jax
import jax.numpy as jnp
from jax import lax
from jax.experimental import pallas as pl
from jax.experimental.pallas import tpu as pltpu


# ----------------------------------------------------------------------------
# Fused kernel
# ----------------------------------------------------------------------------
def _fused_gnn_kernel(*refs):
    (x_in, ea_in, cond_in, scl_in,
     row_oh, col_oh, nb_oh, pool_n,
     inv_deg, inv_npg, inv_epg,
     ne_w1, ne_b1, ne_w2, ne_b2,
     ee_w1, ee_b1, ee_w2, ee_b2,
     ce_w1, ce_b1, ce_w2, ce_b2,
     se_w1, se_b1, se_w2, se_b2,
     ue_w1c, ue_w1s, ue_b1, ue_w2, ue_b2,
     ew1_src, ew1_dst, ew1_ea, ew1_u, ew_b1, ew_w2, ew_b2,
     nw1_x, nw1_agg, nw1_u, nw_b1, nw_w2, nw_b2,
     nd_w1, nd_b1, nd_w2, nd_b2,
     hw1_n, hw1_e, hw1_u, hd_b1, hd_w2, hd_b2,
     x_out, lr_out,
     xh_s, eah_s, u_s, un_s) = refs

    layer = pl.program_id(0)
    n_layers = pl.num_programs(0)
    f32, bf16 = jnp.float32, jnp.bfloat16

    def dot(a, b):
        # bf16 MXU operands, f32 accumulation.
        return jnp.dot(a, b, preferred_element_type=f32)

    def dot_t(a, b):
        # a^T @ b without keeping a transposed copy resident: contract axis 0
        # of both operands (MXU accepts either operand orientation).
        return lax.dot_general(a, b, (((0,), (0,)), ((), ())),
                               preferred_element_type=f32)

    def mlp(inp, w1, b1, w2, b2):
        h = jnp.maximum(dot(inp.astype(bf16), w1[...]) + b1[...], 0.0)
        return dot(h.astype(bf16), w2[...]) + b2[...]

    # ---- encoders: first grid step only; results persist in VMEM scratch ----
    @pl.when(layer == 0)
    def _encode():
        xh_s[...] = mlp(x_in[...], ne_w1, ne_b1, ne_w2, ne_b2)          # [N, H]
        eah_s[...] = mlp(ea_in[...], ee_w1, ee_b1, ee_w2, ee_b2)        # [E, H]
        u_cond = mlp(cond_in[...], ce_w1, ce_b1, ce_w2, ce_b2)          # [B, H]
        u_scale = mlp(scl_in[...], se_w1, se_b1, se_w2, se_b2)          # [B, H]
        # u_encoder(cat([u_cond, u_scale])) == partial dots on W1 row blocks.
        uh = jnp.maximum(dot(u_cond.astype(bf16), ue_w1c[...])
                         + dot(u_scale.astype(bf16), ue_w1s[...])
                         + ue_b1[...], 0.0)
        u = dot(uh.astype(bf16), ue_w2[...]) + ue_b2[...]               # [B, H]
        u_s[...] = u
        # u is never updated by the processor (global_model=None), so the
        # node-level gather u[batch] is computed once and reused every layer.
        un_s[...] = dot(nb_oh[...], u.astype(bf16))                     # [N, H]

    x_prev = xh_s[...]                     # [N, H] f32 (residual source)
    x_b = x_prev.astype(bf16)              # cast activations once per layer
    ea_b = eah_s[...].astype(bf16)
    un_b = un_s[...].astype(bf16)
    roh = row_oh[...]                      # [E, N] bf16
    coh = col_oh[...]                      # [E, N] bf16

    # ---- edge model: Linear(cat([src, dst, ea, u_e])) -> ReLU -> Linear -----
    # Project node-level terms first, then gather once per orientation;
    # u[edge_batch] = (u[batch])[row] shares the row gather with src.
    p_row = dot(x_b, ew1_src[0]) + dot(un_b, ew1_u[0])                  # [N, H]
    p_col = dot(x_b, ew1_dst[0])                                        # [N, H]
    eh = jnp.maximum(dot(roh, p_row.astype(bf16))
                     + dot(coh, p_col.astype(bf16))
                     + dot(ea_b, ew1_ea[0])
                     + ew_b1[0], 0.0)                                   # [E, H]
    ea_new = dot(eh.astype(bf16), ew_w2[0]) + ew_b2[0]                  # [E, H]
    eah_s[...] = ea_new
    ea_new_b = ea_new.astype(bf16)

    # ---- node model (+ residual): scatter_mean of edge msgs onto SOURCE row --
    agg_sum = dot_t(roh, ea_new_b)                                      # [N, H]
    agg = agg_sum * inv_deg[...]                                        # mean (f32)
    nh = jnp.maximum(dot(x_b, nw1_x[0])
                     + dot(agg.astype(bf16), nw1_agg[0])
                     + dot(un_b, nw1_u[0])
                     + nw_b1[0], 0.0)                                   # [N, H]
    x_new = dot(nh.astype(bf16), nw_w2[0]) + nw_b2[0] + x_prev          # residual
    xh_s[...] = x_new

    # ---- node decoder + log-ratio head: last grid step only -----------------
    @pl.when(layer == n_layers - 1)
    def _decode():
        u = u_s[...]
        node_global = dot(pool_n[...], x_new.astype(bf16)) * inv_npg[...]    # [B,H]
        # per-graph edge mean reuses the node-level scatter sum:
        #   sum_{e in graph b} ea_new[e] == sum_{n in graph b} agg_sum[n]
        edge_global = dot(pool_n[...], agg_sum.astype(bf16)) * inv_epg[...]  # [B,H]
        gh = jnp.maximum(dot(node_global.astype(bf16), hw1_n[...])
                         + dot(edge_global.astype(bf16), hw1_e[...])
                         + dot(u.astype(bf16), hw1_u[...])
                         + hd_b1[...], 0.0)
        lr_out[...] = dot(gh.astype(bf16), hd_w2[...]) + hd_b2[...]     # [B, LR]
        dh = jnp.maximum(dot(x_new.astype(bf16), nd_w1[...]) + nd_b1[...], 0.0)
        x_out[...] = dot(dh.astype(bf16), nd_w2[...]) + nd_b2[...]      # [N, out]


# ----------------------------------------------------------------------------
# BlockSpec helpers
# ----------------------------------------------------------------------------
def _const_spec(shape):
    """Whole-array block, constant index => DMA'd into VMEM once, stays resident."""
    ndim = len(shape)

    def imap(l):
        return (0,) * ndim

    return pl.BlockSpec(tuple(shape), imap)


def _layer_spec(shape):
    """Stacked [L, ...] array; block = one layer slice selected by the grid index."""
    ndim = len(shape)
    block = (1,) + tuple(shape[1:])

    def imap(l):
        return (l,) + (0,) * (ndim - 1)

    return pl.BlockSpec(block, imap)


def _vmem_limit_bytes():
    # Derive the scoped VMEM limit from the part instead of hard-coding 64 MiB
    # (that is the whole physical VMEM on v7x).  Leave headroom for compiler
    # scratch and the double-buffered layer-weight blocks.
    try:
        cap = int(pltpu.get_tpu_info().vmem_capacity_bytes)
    except Exception:
        return None  # fall back to the compiler default scoped limit
    return min(int(cap * 0.8), 112 * 1024 * 1024)


# ----------------------------------------------------------------------------
# Parameter construction (deterministic, synthetic)
# ----------------------------------------------------------------------------
def make_params(key, node_in, edge_in, cond_in, scale_dim,
                node_out, hidden, num_layers, log_ratio_dim):
    keys = iter(jax.random.split(key, 256))

    def linear(fan_in, fan_out):
        kw, kb = jax.random.split(next(keys))
        w = jax.random.normal(kw, (fan_in, fan_out), jnp.float32) * (float(fan_in) ** -0.5)
        b = jax.random.normal(kb, (1, fan_out), jnp.float32) * 0.1
        return w, b

    def mlp(fan_in, fan_out):
        w1, b1 = linear(fan_in, hidden)
        w2, b2 = linear(hidden, fan_out)
        return (w1, b1, w2, b2)

    p = {}
    p["node_enc"] = mlp(node_in, hidden)
    p["edge_enc"] = mlp(edge_in, hidden)
    p["cond_enc"] = mlp(cond_in, hidden)
    p["scale_enc"] = mlp(scale_dim, hidden)
    p["u_enc"] = mlp(2 * hidden, hidden)

    e_w1, e_b1, e_w2, e_b2 = [], [], [], []
    n_w1, n_b1, n_w2, n_b2 = [], [], [], []
    for _ in range(num_layers):
        w1, b1 = linear(4 * hidden, hidden)
        w2, b2 = linear(hidden, hidden)
        e_w1.append(w1); e_b1.append(b1); e_w2.append(w2); e_b2.append(b2)
        w1, b1 = linear(3 * hidden, hidden)
        w2, b2 = linear(hidden, hidden)
        n_w1.append(w1); n_b1.append(b1); n_w2.append(w2); n_b2.append(b2)
    p["edge_w1"] = jnp.stack(e_w1); p["edge_b1"] = jnp.stack(e_b1)
    p["edge_w2"] = jnp.stack(e_w2); p["edge_b2"] = jnp.stack(e_b2)
    p["node_w1"] = jnp.stack(n_w1); p["node_b1"] = jnp.stack(n_b1)
    p["node_w2"] = jnp.stack(n_w2); p["node_b2"] = jnp.stack(n_b2)

    p["node_dec"] = mlp(hidden, node_out)
    p["head"] = mlp(3 * hidden, log_ratio_dim)
    return p


# ----------------------------------------------------------------------------
# Forward pass (wrapper: builds gather operators + split weights, one pallas_call)
# ----------------------------------------------------------------------------
def forward(params, x, edge_index, edge_attr, conditions, scale, batch, num_graphs):
    f32, bf16 = jnp.float32, jnp.bfloat16
    N = x.shape[0]
    E = edge_attr.shape[0]
    B = num_graphs
    H = params["node_enc"][2].shape[0]
    node_out_dim = params["node_dec"][2].shape[1]
    log_ratio_dim = params["head"][2].shape[1]
    L = params["edge_w1"].shape[0]

    row = edge_index[0]
    col = edge_index[1]
    edge_batch = batch[row]

    # 0/1 gather operators (exact in bf16).  Only the forward orientation is
    # kept; scatter / pooling contract over axis 0 in-kernel (no transposed
    # duplicate matrices resident in VMEM).
    # TODO(synk): for large graphs switch to SMEM index prefetch + row gathers.
    row_oh = jax.nn.one_hot(row, N, dtype=bf16)        # [E, N]  x[row], u_n[row]
    col_oh = jax.nn.one_hot(col, N, dtype=bf16)        # [E, N]  x[col]
    nb_oh = jax.nn.one_hot(batch, B, dtype=bf16)       # [N, B]  u[batch]
    pool_n = jnp.transpose(nb_oh)                      # [B, N]  (B-scale: tiny)

    # f32 inverse counts (mean normalisation applied in an f32 epilogue).
    deg = jnp.zeros((N,), f32).at[row].add(1.0)
    inv_deg = (1.0 / jnp.maximum(deg, 1.0))[:, None]           # [N, 1]
    npg = jnp.zeros((B,), f32).at[batch].add(1.0)
    inv_npg = (1.0 / jnp.maximum(npg, 1.0))[:, None]           # [B, 1]
    epg = jnp.zeros((B,), f32).at[edge_batch].add(1.0)
    inv_epg = (1.0 / jnp.maximum(epg, 1.0))[:, None]           # [B, 1]

    def enc(name):
        w1, b1, w2, b2 = params[name]
        return [w1.astype(bf16), b1, w2.astype(bf16), b2]

    ue_w1, ue_b1, ue_w2, ue_b2 = params["u_enc"]
    ue_w1 = ue_w1.astype(bf16)                                  # [2H, H]

    const_inputs = [x.astype(f32), edge_attr.astype(f32),
                    conditions.astype(f32), scale.astype(f32),
                    row_oh, col_oh, nb_oh, pool_n,
                    inv_deg, inv_npg, inv_epg]
    const_inputs += (enc("node_enc") + enc("edge_enc")
                     + enc("cond_enc") + enc("scale_enc"))
    const_inputs += [ue_w1[0:H], ue_w1[H:2 * H], ue_b1, ue_w2.astype(bf16), ue_b2]

    # Per-layer weights: W1 matrices split into their concat row-blocks so the
    # kernel never concatenates 32-lane-wide activation pieces.
    ew1 = params["edge_w1"].astype(bf16)                        # [L, 4H, H]
    nw1 = params["node_w1"].astype(bf16)                        # [L, 3H, H]
    layer_inputs = [ew1[:, 0:H], ew1[:, H:2 * H], ew1[:, 2 * H:3 * H], ew1[:, 3 * H:4 * H],
                    params["edge_b1"],
                    params["edge_w2"].astype(bf16), params["edge_b2"],
                    nw1[:, 0:H], nw1[:, H:2 * H], nw1[:, 2 * H:3 * H],
                    params["node_b1"],
                    params["node_w2"].astype(bf16), params["node_b2"]]

    hw1, hb1, hw2, hb2 = params["head"]
    hw1 = hw1.astype(bf16)                                      # [3H, H]
    tail_inputs = enc("node_dec") + [hw1[0:H], hw1[H:2 * H], hw1[2 * H:3 * H],
                                     hb1, hw2.astype(bf16), hb2]

    in_specs = ([_const_spec(a.shape) for a in const_inputs]
                + [_layer_spec(a.shape) for a in layer_inputs]
                + [_const_spec(a.shape) for a in tail_inputs])

    out_shape = (jax.ShapeDtypeStruct((N, node_out_dim), f32),
                 jax.ShapeDtypeStruct((B, log_ratio_dim), f32))
    out_specs = (pl.BlockSpec((N, node_out_dim), lambda l: (0, 0)),
                 pl.BlockSpec((B, log_ratio_dim), lambda l: (0, 0)))

    scratch_shapes = [pltpu.VMEM((N, H), f32),   # node state
                      pltpu.VMEM((E, H), f32),   # edge state
                      pltpu.VMEM((B, H), f32),   # global state u
                      pltpu.VMEM((N, H), f32)]   # u[batch] (constant over layers)

    x_out, log_ratios = pl.pallas_call(
        _fused_gnn_kernel,
        out_shape=out_shape,
        grid=(L,),
        in_specs=in_specs,
        out_specs=out_specs,
        scratch_shapes=scratch_shapes,
        compiler_params=pltpu.CompilerParams(
            # TODO(synk): add a leading "parallel" graph-partition grid axis so
            # v7x's second TensorCore is used once inputs are chunked per graph.
            dimension_semantics=("arbitrary",),
            vmem_limit_bytes=_vmem_limit_bytes()),
    )(*const_inputs, *layer_inputs, *tail_inputs)

    return x_out, log_ratios


# ----------------------------------------------------------------------------
# Example
# ----------------------------------------------------------------------------
if __name__ == "__main__":
    node_in_dim = 8
    edge_in_dim = 6
    cond_in_dim = 5
    scale_dim = 3
    node_out_dim = 4
    hidden_dim = 32
    num_layers = 2
    log_ratio_dim = 2

    N, E, B = 16, 32, 2  # nodes, edges, graphs

    key = jax.random.PRNGKey(0)
    kp, kx, ke, kc, ks, kr, kcol = jax.random.split(key, 7)

    params = make_params(
        kp, node_in_dim, edge_in_dim, cond_in_dim, scale_dim,
        node_out_dim, hidden_dim, num_layers, log_ratio_dim,
    )

    x = jax.random.normal(kx, (N, node_in_dim), jnp.float32)
    edge_attr = jax.random.normal(ke, (E, edge_in_dim), jnp.float32)
    conditions = jax.random.normal(kc, (B, cond_in_dim), jnp.float32)
    scale = jax.random.normal(ks, (B, scale_dim), jnp.float32)

    # 8 nodes per graph; edges stay within their graph.
    batch = jnp.repeat(jnp.arange(B, dtype=jnp.int32), N // B)            # [N]
    edge_graph = jnp.repeat(jnp.arange(B, dtype=jnp.int32), E // B)       # [E]
    row = jax.random.randint(kr, (E,), 0, N // B, jnp.int32) + edge_graph * (N // B)
    col = jax.random.randint(kcol, (E,), 0, N // B, jnp.int32) + edge_graph * (N // B)
    edge_index = jnp.stack([row, col], axis=0)                            # [2, E]

    fwd = jax.jit(functools.partial(forward, num_graphs=B))
    x_out, log_ratios = fwd(params, x, edge_index, edge_attr, conditions, scale, batch)
    jax.block_until_ready((x_out, log_ratios))

    assert x_out.shape == (N, node_out_dim)
    assert log_ratios.shape == (B, log_ratio_dim)
    assert bool(jnp.all(jnp.isfinite(x_out))) and bool(jnp.all(jnp.isfinite(log_ratios)))
    print("KERNEL_OK")
</pallas_src>

<mosaic_0001>
module attributes {stable_mosaic.version = 11 : i64} {
  func.func private @main(%arg0: i32) attributes {dimension_semantics = [#tpu.dimension_semantics<core_parallel>], iteration_bounds = array<i64: 2>, tpu.core_type = #tpu.core_type<sc_scalar_subcore>, window_params = []} {
    return
  }
}

module attributes {stable_mosaic.version = 11 : i64} {
  func.func private @main(%arg0: i32) attributes {dimension_semantics = [#tpu.dimension_semantics<core_parallel>], iteration_bounds = array<i64: 2>, tpu.core_type = #tpu.core_type<sc_scalar_subcore>, window_params = []} {
    return
  }
}

module attributes {stable_mosaic.version = 11 : i64} {
  func.func @_fused_gnn_kernel(%arg0: i32, %arg1: memref<16x8xf32, #tpu.memory_space<vmem>>, %arg2: memref<32x6xf32, #tpu.memory_space<vmem>>, %arg3: memref<2x5xf32, #tpu.memory_space<vmem>>, %arg4: memref<2x3xf32, #tpu.memory_space<vmem>>, %arg5: memref<32x16xbf16, #tpu.memory_space<vmem>>, %arg6: memref<32x16xbf16, #tpu.memory_space<vmem>>, %arg7: memref<16x2xbf16, #tpu.memory_space<vmem>>, %arg8: memref<2x16xbf16, #tpu.memory_space<vmem>>, %arg9: memref<16x1xf32, #tpu.memory_space<vmem>>, %arg10: memref<2x1xf32, #tpu.memory_space<vmem>>, %arg11: memref<2x1xf32, #tpu.memory_space<vmem>>, %arg12: memref<8x32xbf16, #tpu.memory_space<vmem>>, %arg13: memref<1x32xf32, #tpu.memory_space<vmem>>, %arg14: memref<32x32xbf16, #tpu.memory_space<vmem>>, %arg15: memref<1x32xf32, #tpu.memory_space<vmem>>, %arg16: memref<6x32xbf16, #tpu.memory_space<vmem>>, %arg17: memref<1x32xf32, #tpu.memory_space<vmem>>, %arg18: memref<32x32xbf16, #tpu.memory_space<vmem>>, %arg19: memref<1x32xf32, #tpu.memory_space<vmem>>, %arg20: memref<5x32xbf16, #tpu.memory_space<vmem>>, %arg21: memref<1x32xf32, #tpu.memory_space<vmem>>, %arg22: memref<32x32xbf16, #tpu.memory_space<vmem>>, %arg23: memref<1x32xf32, #tpu.memory_space<vmem>>, %arg24: memref<3x32xbf16, #tpu.memory_space<vmem>>, %arg25: memref<1x32xf32, #tpu.memory_space<vmem>>, %arg26: memref<32x32xbf16, #tpu.memory_space<vmem>>, %arg27: memref<1x32xf32, #tpu.memory_space<vmem>>, %arg28: memref<32x32xbf16, #tpu.memory_space<vmem>>, %arg29: memref<32x32xbf16, #tpu.memory_space<vmem>>, %arg30: memref<1x32xf32, #tpu.memory_space<vmem>>, %arg31: memref<32x32xbf16, #tpu.memory_space<vmem>>, %arg32: memref<1x32xf32, #tpu.memory_space<vmem>>, %arg33: memref<1x32x32xbf16, #tpu.memory_space<vmem>>, %arg34: memref<1x32x32xbf16, #tpu.memory_space<vmem>>, %arg35: memref<1x32x32xbf16, #tpu.memory_space<vmem>>, %arg36: memref<1x32x32xbf16, #tpu.memory_space<vmem>>, %arg37: memref<1x1x32xf32, #tpu.memory_space<vmem>>, %arg38: memref<1x32x32xbf16, #tpu.memory_space<vmem>>, %arg39: memref<1x1x32xf32, #tpu.memory_space<vmem>>, %arg40: memref<1x32x32xbf16, #tpu.memory_space<vmem>>, %arg41: memref<1x32x32xbf16, #tpu.memory_space<vmem>>, %arg42: memref<1x32x32xbf16, #tpu.memory_space<vmem>>, %arg43: memref<1x1x32xf32, #tpu.memory_space<vmem>>, %arg44: memref<1x32x32xbf16, #tpu.memory_space<vmem>>, %arg45: memref<1x1x32xf32, #tpu.memory_space<vmem>>, %arg46: memref<32x32xbf16, #tpu.memory_space<vmem>>, %arg47: memref<1x32xf32, #tpu.memory_space<vmem>>, %arg48: memref<32x4xbf16, #tpu.memory_space<vmem>>, %arg49: memref<1x4xf32, #tpu.memory_space<vmem>>, %arg50: memref<32x32xbf16, #tpu.memory_space<vmem>>, %arg51: memref<32x32xbf16, #tpu.memory_space<vmem>>, %arg52: memref<32x32xbf16, #tpu.memory_space<vmem>>, %arg53: memref<1x32xf32, #tpu.memory_space<vmem>>, %arg54: memref<32x2xbf16, #tpu.memory_space<vmem>>, %arg55: memref<1x2xf32, #tpu.memory_space<vmem>>, %arg56: memref<16x4xf32, #tpu.memory_space<vmem>>, %arg57: memref<2x2xf32, #tpu.memory_space<vmem>>, %arg58: memref<16x32xf32, #tpu.memory_space<vmem>>, %arg59: memref<32x32xf32, #tpu.memory_space<vmem>>, %arg60: memref<2x32xf32, #tpu.memory_space<vmem>>, %arg61: memref<16x32xf32, #tpu.memory_space<vmem>>) attributes {dimension_semantics = [#tpu.dimension_semantics<arbitrary>], iteration_bounds = array<i64: 2>, scalar_prefetch = 0 : i64, scratch_operands = 4 : i64, tpu.core_type = #tpu.core_type<tc>, window_params = [{pipeline_mode = #tpu.pipeline_mode<synchronous>, transform_indices = @transform_0, window_bounds = array<i64: 16, 8>}, {pipeline_mode = #tpu.pipeline_mode<synchronous>, transform_indices = @transform_1, window_bounds = array<i64: 32, 6>}, {pipeline_mode = #tpu.pipeline_mode<synchronous>, transform_indices = @transform_2, window_bounds = array<i64: 2, 5>}, {pipeline_mode = #tpu.pipeline_mode<synchronous>, transform_indices = @transform_3, window_bounds = array<i64: 2, 3>}, {pipeline_mode = #tpu.pipeline_mode<synchronous>, transform_indices = @transform_4, window_bounds = array<i64: 32, 16>}, {pipeline_mode = #tpu.pipeline_mode<synchronous>, transform_indices = @transform_5, window_bounds = array<i64: 32, 16>}, {pipeline_mode = #tpu.pipeline_mode<synchronous>, transform_indices = @transform_6, window_bounds = array<i64: 16, 2>}, {pipeline_mode = #tpu.pipeline_mode<synchronous>, transform_indices = @transform_7, window_bounds = array<i64: 2, 16>}, {pipeline_mode = #tpu.pipeline_mode<synchronous>, transform_indices = @transform_8, window_bounds = array<i64: 16, 1>}, {pipeline_mode = #tpu.pipeline_mode<synchronous>, transform_indices = @transform_9, window_bounds = array<i64: 2, 1>}, {pipeline_mode = #tpu.pipeline_mode<synchronous>, transform_indices = @transform_10, window_bounds = array<i64: 2, 1>}, {pipeline_mode = #tpu.pipeline_mode<synchronous>, transform_indices = @transform_11, window_bounds = array<i64: 8, 32>}, {pipeline_mode = #tpu.pipeline_mode<synchronous>, transform_indices = @transform_12, window_bounds = array<i64: 1, 32>}, {pipeline_mode = #tpu.pipeline_mode<synchronous>, transform_indices = @transform_13, window_bounds = array<i64: 32, 32>}, {pipeline_mode = #tpu.pipeline_mode<synchronous>, transform_indices = @transform_14, window_bounds = array<i64: 1, 32>}, {pipeline_mode = #tpu.pipeline_mode<synchronous>, transform_indices = @transform_15, window_bounds = array<i64: 6, 32>}, {pipeline_mode = #tpu.pipeline_mode<synchronous>, transform_indices = @transform_16, window_bounds = array<i64: 1, 32>}, {pipeline_mode = #tpu.pipeline_mode<synchronous>, transform_indices = @transform_17, window_bounds = array<i64: 32, 32>}, {pipeline_mode = #tpu.pipeline_mode<synchronous>, transform_indices = @transform_18, window_bounds = array<i64: 1, 32>}, {pipeline_mode = #tpu.pipeline_mode<synchronous>, transform_indices = @transform_19, window_bounds = array<i64: 5, 32>}, {pipeline_mode = #tpu.pipeline_mode<synchronous>, transform_indices = @transform_20, window_bounds = array<i64: 1, 32>}, {pipeline_mode = #tpu.pipeline_mode<synchronous>, transform_indices = @transform_21, window_bounds = array<i64: 32, 32>}, {pipeline_mode = #tpu.pipeline_mode<synchronous>, transform_indices = @transform_22, window_bounds = array<i64: 1, 32>}, {pipeline_mode = #tpu.pipeline_mode<synchronous>, transform_indices = @transform_23, window_bounds = array<i64: 3, 32>}, {pipeline_mode = #tpu.pipeline_mode<synchronous>, transform_indices = @transform_24, window_bounds = array<i64: 1, 32>}, {pipeline_mode = #tpu.pipeline_mode<synchronous>, transform_indices = @transform_25, window_bounds = array<i64: 32, 32>}, {pipeline_mode = #tpu.pipeline_mode<synchronous>, transform_indices = @transform_26, window_bounds = array<i64: 1, 32>}, {pipeline_mode = #tpu.pipeline_mode<synchronous>, transform_indices = @transform_27, window_bounds = array<i64: 32, 32>}, {pipeline_mode = #tpu.pipeline_mode<synchronous>, transform_indices = @transform_28, window_bounds = array<i64: 32, 32>}, {pipeline_mode = #tpu.pipeline_mode<synchronous>, transform_indices = @transform_29, window_bounds = array<i64: 1, 32>}, {pipeline_mode = #tpu.pipeline_mode<synchronous>, transform_indices = @transform_30, window_bounds = array<i64: 32, 32>}, {pipeline_mode = #tpu.pipeline_mode<synchronous>, transform_indices = @transform_31, window_bounds = array<i64: 1, 32>}, {transform_indices = @transform_32, window_bounds = array<i64: 1, 32, 32>}, {transform_indices = @transform_33, window_bounds = array<i64: 1, 32, 32>}, {transform_indices = @transform_34, window_bounds = array<i64: 1, 32, 32>}, {transform_indices = @transform_35, window_bounds = array<i64: 1, 32, 32>}, {transform_indices = @transform_36, window_bounds = array<i64: 1, 1, 32>}, {transform_indices = @transform_37, window_bounds = array<i64: 1, 32, 32>}, {transform_indices = @transform_38, window_bounds = array<i64: 1, 1, 32>}, {transform_indices = @transform_39, window_bounds = array<i64: 1, 32, 32>}, {transform_indices = @transform_40, window_bounds = array<i64: 1, 32, 32>}, {transform_indices = @transform_41, window_bounds = array<i64: 1, 32, 32>}, {transform_indices = @transform_42, window_bounds = array<i64: 1, 1, 32>}, {transform_indices = @transform_43, window_bounds = array<i64: 1, 32, 32>}, {transform_indices = @transform_44, window_bounds = array<i64: 1, 1, 32>}, {pipeline_mode = #tpu.pipeline_mode<synchronous>, transform_indices = @transform_45, window_bounds = array<i64: 32, 32>}, {pipeline_mode = #tpu.pipeline_mode<synchronous>, transform_indices = @transform_46, window_bounds = array<i64: 1, 32>}, {pipeline_mode = #tpu.pipeline_mode<synchronous>, transform_indices = @transform_47, window_bounds = array<i64: 32, 4>}, {pipeline_mode = #tpu.pipeline_mode<synchronous>, transform_indices = @transform_48, window_bounds = array<i64: 1, 4>}, {pipeline_mode = #tpu.pipeline_mode<synchronous>, transform_indices = @transform_49, window_bounds = array<i64: 32, 32>}, {pipeline_mode = #tpu.pipeline_mode<synchronous>, transform_indices = @transform_50, window_bounds = array<i64: 32, 32>}, {pipeline_mode = #tpu.pipeline_mode<synchronous>, transform_indices = @transform_51, window_bounds = array<i64: 32, 32>}, {pipeline_mode = #tpu.pipeline_mode<synchronous>, transform_indices = @transform_52, window_bounds = array<i64: 1, 32>}, {pipeline_mode = #tpu.pipeline_mode<synchronous>, transform_indices = @transform_53, window_bounds = array<i64: 32, 2>}, {pipeline_mode = #tpu.pipeline_mode<synchronous>, transform_indices = @transform_54, window_bounds = array<i64: 1, 2>}, {pipeline_mode = #tpu.pipeline_mode<synchronous>, transform_indices = @transform_55, window_bounds = array<i64: 16, 4>}, {pipeline_mode = #tpu.pipeline_mode<synchronous>, transform_indices = @transform_56, window_bounds = array<i64: 2, 2>}]} {
    %c0_i32 = arith.constant 0 : i32
    %0 = arith.cmpi eq, %arg0, %c0_i32 : i32
    %1 = arith.extui %0 : i1 to i32
    %c0_i32_0 = arith.constant 0 : i32
    %2 = arith.cmpi ne, %1, %c0_i32_0 : i32
    scf.if %2 {
      %c0_69 = arith.constant 0 : index
      %c0_70 = arith.constant 0 : index
      %81 = vector.load %arg1[%c0_69, %c0_70] : memref<16x8xf32, #tpu.memory_space<vmem>>, vector<16x8xf32>
      %82 = arith.truncf %81 : vector<16x8xf32> to vector<16x8xbf16>
      %c0_71 = arith.constant 0 : index
      %c0_72 = arith.constant 0 : index
      %83 = vector.load %arg12[%c0_71, %c0_72] : memref<8x32xbf16, #tpu.memory_space<vmem>>, vector<8x32xbf16>
      %cst_73 = arith.constant dense<0.000000e+00> : vector<16x32xf32>
      %84 = tpu.matmul %82, %83, %cst_73 {dimension_numbers = #tpu.dot_dimension_numbers<[1], [0], [0], [1], [0, 0, 1, 1], [], []>} : vector<16x8xbf16>, vector<8x32xbf16>, vector<16x32xf32> -> vector<16x32xf32>
      %c0_74 = arith.constant 0 : index
      %c0_75 = arith.constant 0 : index
      %85 = vector.load %arg13[%c0_74, %c0_75] : memref<1x32xf32, #tpu.memory_space<vmem>>, vector<1x32xf32>
      %86 = vector.broadcast %85 : vector<1x32xf32> to vector<16x32xf32>
      %87 = arith.addf %84, %86 : vector<16x32xf32>
      %cst_76 = arith.constant 0.000000e+00 : f32
      %88 = vector.broadcast %cst_76 : f32 to vector<16x32xf32>
      %89 = arith.maximumf %87, %88 : vector<16x32xf32>
      %90 = arith.truncf %89 : vector<16x32xf32> to vector<16x32xbf16>
      %c0_77 = arith.constant 0 : index
      %c0_78 = arith.constant 0 : index
      %91 = vector.load %arg14[%c0_77, %c0_78] : memref<32x32xbf16, #tpu.memory_space<vmem>>, vector<32x32xbf16>
      %cst_79 = arith.constant dense<0.000000e+00> : vector<16x32xf32>
      %92 = tpu.matmul %90, %91, %cst_79 {dimension_numbers = #tpu.dot_dimension_numbers<[1], [0], [0], [1], [0, 0, 1, 1], [], []>} : vector<16x32xbf16>, vector<32x32xbf16>, vector<16x32xf32> -> vector<16x32xf32>
      %c0_80 = arith.constant 0 : index
      %c0_81 = arith.constant 0 : index
      %93 = vector.load %arg15[%c0_80, %c0_81] : memref<1x32xf32, #tpu.memory_space<vmem>>, vector<1x32xf32>
      %94 = vector.broadcast %93 : vector<1x32xf32> to vector<16x32xf32>
      %95 = arith.addf %92, %94 : vector<16x32xf32>
      %c0_82 = arith.constant 0 : index
      %c0_83 = arith.constant 0 : index
      %96 = vector.load %arg58[%c0_82, %c0_83] : memref<16x32xf32, #tpu.memory_space<vmem>>, vector<16x32xf32>
      tpu.vector_store %arg58[%c0_82, %c0_83], %95 {strides = array<i32>} : memref<16x32xf32, #tpu.memory_space<vmem>>, vector<16x32xf32>,
      %c0_84 = arith.constant 0 : index
      %c0_85 = arith.constant 0 : index
      %97 = vector.load %arg2[%c0_84, %c0_85] : memref<32x6xf32, #tpu.memory_space<vmem>>, vector<32x6xf32>
      %98 = arith.truncf %97 : vector<32x6xf32> to vector<32x6xbf16>
      %c0_86 = arith.constant 0 : index
      %c0_87 = arith.constant 0 : index
      %99 = vector.load %arg16[%c0_86, %c0_87] : memref<6x32xbf16, #tpu.memory_space<vmem>>, vector<6x32xbf16>
      %cst_88 = arith.constant dense<0.000000e+00> : vector<32x32xf32>
      %100 = tpu.matmul %98, %99, %cst_88 {dimension_numbers = #tpu.dot_dimension_numbers<[1], [0], [0], [1], [0, 0, 1, 1], [], []>} : vector<32x6xbf16>, vector<6x32xbf16>, vector<32x32xf32> -> vector<32x32xf32>
      %c0_89 = arith.constant 0 : index
      %c0_90 = arith.constant 0 : index
      %101 = vector.load %arg17[%c0_89, %c0_90] : memref<1x32xf32, #tpu.memory_space<vmem>>, vector<1x32xf32>
      %102 = vector.broadcast %101 : vector<1x32xf32> to vector<32x32xf32>
      %103 = arith.addf %100, %102 : vector<32x32xf32>
      %cst_91 = arith.constant 0.000000e+00 : f32
      %104 = vector.broadcast %cst_91 : f32 to vector<32x32xf32>
      %105 = arith.maximumf %103, %104 : vector<32x32xf32>
      %106 = arith.truncf %105 : vector<32x32xf32> to vector<32x32xbf16>
      %c0_92 = arith.constant 0 : index
      %c0_93 = arith.constant 0 : index
      %107 = vector.load %arg18[%c0_92, %c0_93] : memref<32x32xbf16, #tpu.memory_space<vmem>>, vector<32x32xbf16>
      %cst_94 = arith.constant dense<0.000000e+00> : vector<32x32xf32>
      %108 = tpu.matmul %106, %107, %cst_94 {dimension_numbers = #tpu.dot_dimension_numbers<[1], [0], [0], [1], [0, 0, 1, 1], [], []>} : vector<32x32xbf16>, vector<32x32xbf16>, vector<32x32xf32> -> vector<32x32xf32>
      %c0_95 = arith.constant 0 : index
      %c0_96 = arith.constant 0 : index
      %109 = vector.load %arg19[%c0_95, %c0_96] : memref<1x32xf32, #tpu.memory_space<vmem>>, vector<1x32xf32>
      %110 = vector.broadcast %109 : vector<1x32xf32> to vector<32x32xf32>
      %111 = arith.addf %108, %110 : vector<32x32xf32>
      %c0_97 = arith.constant 0 : index
      %c0_98 = arith.constant 0 : index
      %112 = vector.load %arg59[%c0_97, %c0_98] : memref<32x32xf32, #tpu.memory_space<vmem>>, vector<32x32xf32>
      tpu.vector_store %arg59[%c0_97, %c0_98], %111 {strides = array<i32>} : memref<32x32xf32, #tpu.memory_space<vmem>>, vector<32x32xf32>,
      %c0_99 = arith.constant 0 : index
      %c0_100 = arith.constant 0 : index
      %113 = vector.load %arg3[%c0_99, %c0_100] : memref<2x5xf32, #tpu.memory_space<vmem>>, vector<2x5xf32>
      %114 = arith.truncf %113 : vector<2x5xf32> to vector<2x5xbf16>
      %c0_101 = arith.constant 0 : index
      %c0_102 = arith.constant 0 : index
      %115 = vector.load %arg20[%c0_101, %c0_102] : memref<5x32xbf16, #tpu.memory_space<vmem>>, vector<5x32xbf16>
      %cst_103 = arith.constant dense<0.000000e+00> : vector<2x32xf32>
      %116 = tpu.matmul %114, %115, %cst_103 {dimension_numbers = #tpu.dot_dimension_numbers<[1], [0], [0], [1], [0, 0, 1, 1], [], []>} : vector<2x5xbf16>, vector<5x32xbf16>, vector<2x32xf32> -> vector<2x32xf32>
      %c0_104 = arith.constant 0 : index
      %c0_105 = arith.constant 0 : index
      %117 = vector.load %arg21[%c0_104, %c0_105] : memref<1x32xf32, #tpu.memory_space<vmem>>, vector<1x32xf32>
      %118 = vector.broadcast %117 : vector<1x32xf32> to vector<2x32xf32>
      %119 = arith.addf %116, %118 : vector<2x32xf32>
      %cst_106 = arith.constant 0.000000e+00 : f32
      %120 = vector.broadcast %cst_106 : f32 to vector<2x32xf32>
      %121 = arith.maximumf %119, %120 : vector<2x32xf32>
      %122 = arith.truncf %121 : vector<2x32xf32> to vector<2x32xbf16>
      %c0_107 = arith.constant 0 : index
      %c0_108 = arith.constant 0 : index
      %123 = vector.load %arg22[%c0_107, %c0_108] : memref<32x32xbf16, #tpu.memory_space<vmem>>, vector<32x32xbf16>
      %cst_109 = arith.constant dense<0.000000e+00> : vector<2x32xf32>
      %124 = tpu.matmul %122, %123, %cst_109 {dimension_numbers = #tpu.dot_dimension_numbers<[1], [0], [0], [1], [0, 0, 1, 1], [], []>} : vector<2x32xbf16>, vector<32x32xbf16>, vector<2x32xf32> -> vector<2x32xf32>
      %c0_110 = arith.constant 0 : index
      %c0_111 = arith.constant 0 : index
      %125 = vector.load %arg23[%c0_110, %c0_111] : memref<1x32xf32, #tpu.memory_space<vmem>>, vector<1x32xf32>
      %126 = vector.broadcast %125 : vector<1x32xf32> to vector<2x32xf32>
      %127 = arith.addf %124, %126 : vector<2x32xf32>
      %c0_112 = arith.constant 0 : index
      %c0_113 = arith.constant 0 : index
      %128 = vector.load %arg4[%c0_112, %c0_113] : memref<2x3xf32, #tpu.memory_space<vmem>>, vector<2x3xf32>
      %129 = arith.truncf %128 : vector<2x3xf32> to vector<2x3xbf16>
      %c0_114 = arith.constant 0 : index
      %c0_115 = arith.constant 0 : index
      %130 = vector.load %arg24[%c0_114, %c0_115] : memref<3x32xbf16, #tpu.memory_space<vmem>>, vector<3x32xbf16>
      %cst_116 = arith.constant dense<0.000000e+00> : vector<2x32xf32>
      %131 = tpu.matmul %129, %130, %cst_116 {dimension_numbers = #tpu.dot_dimension_numbers<[1], [0], [0], [1], [0, 0, 1, 1], [], []>} : vector<2x3xbf16>, vector<3x32xbf16>, vector<2x32xf32> -> vector<2x32xf32>
      %c0_117 = arith.constant 0 : index
      %c0_118 = arith.constant 0 : index
      %132 = vector.load %arg25[%c0_117, %c0_118] : memref<1x32xf32, #tpu.memory_space<vmem>>, vector<1x32xf32>
      %133 = vector.broadcast %132 : vector<1x32xf32> to vector<2x32xf32>
      %134 = arith.addf %131, %133 : vector<2x32xf32>
      %cst_119 = arith.constant 0.000000e+00 : f32
      %135 = vector.broadcast %cst_119 : f32 to vector<2x32xf32>
      %136 = arith.maximumf %134, %135 : vector<2x32xf32>
      %137 = arith.truncf %136 : vector<2x32xf32> to vector<2x32xbf16>
      %c0_120 = arith.constant 0 : index
      %c0_121 = arith.constant 0 : index
      %138 = vector.load %arg26[%c0_120, %c0_121] : memref<32x32xbf16, #tpu.memory_space<vmem>>, vector<32x32xbf16>
      %cst_122 = arith.constant dense<0.000000e+00> : vector<2x32xf32>
      %139 = tpu.matmul %137, %138, %cst_122 {dimension_numbers = #tpu.dot_dimension_numbers<[1], [0], [0], [1], [0, 0, 1, 1], [], []>} : vector<2x32xbf16>, vector<32x32xbf16>, vector<2x32xf32> -> vector<2x32xf32>
      %c0_123 = arith.constant 0 : index
      %c0_124 = arith.constant 0 : index
      %140 = vector.load %arg27[%c0_123, %c0_124] : memref<1x32xf32, #tpu.memory_space<vmem>>, vector<1x32xf32>
      %141 = vector.broadcast %140 : vector<1x32xf32> to vector<2x32xf32>
      %142 = arith.addf %139, %141 : vector<2x32xf32>
      %143 = arith.truncf %127 : vector<2x32xf32> to vector<2x32xbf16>
      %c0_125 = arith.constant 0 : index
      %c0_126 = arith.constant 0 : index
      %144 = vector.load %arg28[%c0_125, %c0_126] : memref<32x32xbf16, #tpu.memory_space<vmem>>, vector<32x32xbf16>
      %cst_127 = arith.constant dense<0.000000e+00> : vector<2x32xf32>
      %145 = tpu.matmul %143, %144, %cst_127 {dimension_numbers = #tpu.dot_dimension_numbers<[1], [0], [0], [1], [0, 0, 1, 1], [], []>} : vector<2x32xbf16>, vector<32x32xbf16>, vector<2x32xf32> -> vector<2x32xf32>
      %146 = arith.truncf %142 : vector<2x32xf32> to vector<2x32xbf16>
      %c0_128 = arith.constant 0 : index
      %c0_129 = arith.constant 0 : index
      %147 = vector.load %arg29[%c0_128, %c0_129] : memref<32x32xbf16, #tpu.memory_space<vmem>>, vector<32x32xbf16>
      %cst_130 = arith.constant dense<0.000000e+00> : vector<2x32xf32>
      %148 = tpu.matmul %146, %147, %cst_130 {dimension_numbers = #tpu.dot_dimension_numbers<[1], [0], [0], [1], [0, 0, 1, 1], [], []>} : vector<2x32xbf16>, vector<32x32xbf16>, vector<2x32xf32> -> vector<2x32xf32>
      %149 = arith.addf %145, %148 : vector<2x32xf32>
      %c0_131 = arith.constant 0 : index
      %c0_132 = arith.constant 0 : index
      %150 = vector.load %arg30[%c0_131, %c0_132] : memref<1x32xf32, #tpu.memory_space<vmem>>, vector<1x32xf32>
      %151 = vector.broadcast %150 : vector<1x32xf32> to vector<2x32xf32>
      %152 = arith.addf %149, %151 : vector<2x32xf32>
      %cst_133 = arith.constant 0.000000e+00 : f32
      %153 = vector.broadcast %cst_133 : f32 to vector<2x32xf32>
      %154 = arith.maximumf %152, %153 : vector<2x32xf32>
      %155 = arith.truncf %154 : vector<2x32xf32> to vector<2x32xbf16>
      %c0_134 = arith.constant 0 : index
      %c0_135 = arith.constant 0 : index
      %156 = vector.load %arg31[%c0_134, %c0_135] : memref<32x32xbf16, #tpu.memory_space<vmem>>, vector<32x32xbf16>
      %cst_136 = arith.constant dense<0.000000e+00> : vector<2x32xf32>
      %157 = tpu.matmul %155, %156, %cst_136 {dimension_numbers = #tpu.dot_dimension_numbers<[1], [0], [0], [1], [0, 0, 1, 1], [], []>} : vector<2x32xbf16>, vector<32x32xbf16>, vector<2x32xf32> -> vector<2x32xf32>
      %c0_137 = arith.constant 0 : index
      %c0_138 = arith.constant 0 : index
      %158 = vector.load %arg32[%c0_137, %c0_138] : memref<1x32xf32, #tpu.memory_space<vmem>>, vector<1x32xf32>
      %159 = vector.broadcast %158 : vector<1x32xf32> to vector<2x32xf32>
      %160 = arith.addf %157, %159 : vector<2x32xf32>
      %c0_139 = arith.constant 0 : index
      %c0_140 = arith.constant 0 : index
      %161 = vector.load %arg60[%c0_139, %c0_140] : memref<2x32xf32, #tpu.memory_space<vmem>>, vector<2x32xf32>
      tpu.vector_store %arg60[%c0_139, %c0_140], %160 {strides = array<i32>} : memref<2x32xf32, #tpu.memory_space<vmem>>, vector<2x32xf32>,
      %c0_141 = arith.constant 0 : index
      %c0_142 = arith.constant 0 : index
      %162 = vector.load %arg7[%c0_141, %c0_142] : memref<16x2xbf16, #tpu.memory_space<vmem>>, vector<16x2xbf16>
      %163 = arith.truncf %160 : vector<2x32xf32> to vector<2x32xbf16>
      %cst_143 = arith.constant dense<0.000000e+00> : vector<16x32xf32>
      %164 = tpu.matmul %162, %163, %cst_143 {dimension_numbers = #tpu.dot_dimension_numbers<[1], [0], [0], [1], [0, 0, 1, 1], [], []>} : vector<16x2xbf16>, vector<2x32xbf16>, vector<16x32xf32> -> vector<16x32xf32>
      %c0_144 = arith.constant 0 : index
      %c0_145 = arith.constant 0 : index
      %165 = vector.load %arg61[%c0_144, %c0_145] : memref<16x32xf32, #tpu.memory_space<vmem>>, vector<16x32xf32>
      tpu.vector_store %arg61[%c0_144, %c0_145], %164 {strides = array<i32>} : memref<16x32xf32, #tpu.memory_space<vmem>>, vector<16x32xf32>,
    } else {
    }
    %c0 = arith.constant 0 : index
    %c0_1 = arith.constant 0 : index
    %3 = vector.load %arg58[%c0, %c0_1] : memref<16x32xf32, #tpu.memory_space<vmem>>, vector<16x32xf32>
    %4 = arith.truncf %3 : vector<16x32xf32> to vector<16x32xbf16>
    %c0_2 = arith.constant 0 : index
    %c0_3 = arith.constant 0 : index
    %5 = vector.load %arg59[%c0_2, %c0_3] : memref<32x32xf32, #tpu.memory_space<vmem>>, vector<32x32xf32>
    %6 = arith.truncf %5 : vector<32x32xf32> to vector<32x32xbf16>
    %c0_4 = arith.constant 0 : index
    %c0_5 = arith.constant 0 : index
    %7 = vector.load %arg61[%c0_4, %c0_5] : memref<16x32xf32, #tpu.memory_space<vmem>>, vector<16x32xf32>
    %8 = arith.truncf %7 : vector<16x32xf32> to vector<16x32xbf16>
    %c0_6 = arith.constant 0 : index
    %c0_7 = arith.constant 0 : index
    %9 = vector.load %arg5[%c0_6, %c0_7] : memref<32x16xbf16, #tpu.memory_space<vmem>>, vector<32x16xbf16>
    %c0_8 = arith.constant 0 : index
    %c0_9 = arith.constant 0 : index
    %10 = vector.load %arg6[%c0_8, %c0_9] : memref<32x16xbf16, #tpu.memory_space<vmem>>, vector<32x16xbf16>
    %c0_10 = arith.constant 0 : index
    %c0_11 = arith.constant 0 : index
    %c0_12 = arith.constant 0 : index
    %11 = vector.load %arg33[%c0_10, %c0_11, %c0_12] : memref<1x32x32xbf16, #tpu.memory_space<vmem>>, vector<1x32x32xbf16>
    %12 = vector.shape_cast %11 : vector<1x32x32xbf16> to vector<32x32xbf16>
    %cst = arith.constant dense<0.000000e+00> : vector<16x32xf32>
    %13 = tpu.matmul %4, %12, %cst {dimension_numbers = #tpu.dot_dimension_numbers<[1], [0], [0], [1], [0, 0, 1, 1], [], []>} : vector<16x32xbf16>, vector<32x32xbf16>, vector<16x32xf32> -> vector<16x32xf32>
    %c0_13 = arith.constant 0 : index
    %c0_14 = arith.constant 0 : index
    %c0_15 = arith.constant 0 : index
    %14 = vector.load %arg36[%c0_13, %c0_14, %c0_15] : memref<1x32x32xbf16, #tpu.memory_space<vmem>>, vector<1x32x32xbf16>
    %15 = vector.shape_cast %14 : vector<1x32x32xbf16> to vector<32x32xbf16>
    %cst_16 = arith.constant dense<0.000000e+00> : vector<16x32xf32>
    %16 = tpu.matmul %8, %15, %cst_16 {dimension_numbers = #tpu.dot_dimension_numbers<[1], [0], [0], [1], [0, 0, 1, 1], [], []>} : vector<16x32xbf16>, vector<32x32xbf16>, vector<16x32xf32> -> vector<16x32xf32>
    %17 = arith.addf %13, %16 : vector<16x32xf32>
    %c0_17 = arith.constant 0 : index
    %c0_18 = arith.constant 0 : index
    %c0_19 = arith.constant 0 : index
    %18 = vector.load %arg34[%c0_17, %c0_18, %c0_19] : memref<1x32x32xbf16, #tpu.memory_space<vmem>>, vector<1x32x32xbf16>
    %19 = vector.shape_cast %18 : vector<1x32x32xbf16> to vector<32x32xbf16>
    %cst_20 = arith.constant dense<0.000000e+00> : vector<16x32xf32>
    %20 = tpu.matmul %4, %19, %cst_20 {dimension_numbers = #tpu.dot_dimension_numbers<[1], [0], [0], [1], [0, 0, 1, 1], [], []>} : vector<16x32xbf16>, vector<32x32xbf16>, vector<16x32xf32> -> vector<16x32xf32>
    %21 = arith.truncf %17 : vector<16x32xf32> to vector<16x32xbf16>
    %cst_21 = arith.constant dense<0.000000e+00> : vector<32x32xf32>
    %22 = tpu.matmul %9, %21, %cst_21 {dimension_numbers = #tpu.dot_dimension_numbers<[1], [0], [0], [1], [0, 0, 1, 1], [], []>} : vector<32x16xbf16>, vector<16x32xbf16>, vector<32x32xf32> -> vector<32x32xf32>
    %23 = arith.truncf %20 : vector<16x32xf32> to vector<16x32xbf16>
    %cst_22 = arith.constant dense<0.000000e+00> : vector<32x32xf32>
    %24 = tpu.matmul %10, %23, %cst_22 {dimension_numbers = #tpu.dot_dimension_numbers<[1], [0], [0], [1], [0, 0, 1, 1], [], []>} : vector<32x16xbf16>, vector<16x32xbf16>, vector<32x32xf32> -> vector<32x32xf32>
    %25 = arith.addf %22, %24 : vector<32x32xf32>
    %c0_23 = arith.constant 0 : index
    %c0_24 = arith.constant 0 : index
    %c0_25 = arith.constant 0 : index
    %26 = vector.load %arg35[%c0_23, %c0_24, %c0_25] : memref<1x32x32xbf16, #tpu.memory_space<vmem>>, vector<1x32x32xbf16>
    %27 = vector.shape_cast %26 : vector<1x32x32xbf16> to vector<32x32xbf16>
    %cst_26 = arith.constant dense<0.000000e+00> : vector<32x32xf32>
    %28 = tpu.matmul %6, %27, %cst_26 {dimension_numbers = #tpu.dot_dimension_numbers<[1], [0], [0], [1], [0, 0, 1, 1], [], []>} : vector<32x32xbf16>, vector<32x32xbf16>, vector<32x32xf32> -> vector<32x32xf32>
    %29 = arith.addf %25, %28 : vector<32x32xf32>
    %c0_27 = arith.constant 0 : index
    %c0_28 = arith.constant 0 : index
    %c0_29 = arith.constant 0 : index
    %30 = vector.load %arg37[%c0_27, %c0_28, %c0_29] : memref<1x1x32xf32, #tpu.memory_space<vmem>>, vector<1x1x32xf32>
    %31 = vector.shape_cast %30 : vector<1x1x32xf32> to vector<1x32xf32>
    %32 = vector.broadcast %31 : vector<1x32xf32> to vector<32x32xf32>
    %33 = arith.addf %29, %32 : vector<32x32xf32>
    %cst_30 = arith.constant 0.000000e+00 : f32
    %34 = vector.broadcast %cst_30 : f32 to vector<32x32xf32>
    %35 = arith.maximumf %33, %34 : vector<32x32xf32>
    %36 = arith.truncf %35 : vector<32x32xf32> to vector<32x32xbf16>
    %c0_31 = arith.constant 0 : index
    %c0_32 = arith.constant 0 : index
    %c0_33 = arith.constant 0 : index
    %37 = vector.load %arg38[%c0_31, %c0_32, %c0_33] : memref<1x32x32xbf16, #tpu.memory_space<vmem>>, vector<1x32x32xbf16>
    %38 = vector.shape_cast %37 : vector<1x32x32xbf16> to vector<32x32xbf16>
    %cst_34 = arith.constant dense<0.000000e+00> : vector<32x32xf32>
    %39 = tpu.matmul %36, %38, %cst_34 {dimension_numbers = #tpu.dot_dimension_numbers<[1], [0], [0], [1], [0, 0, 1, 1], [], []>} : vector<32x32xbf16>, vector<32x32xbf16>, vector<32x32xf32> -> vector<32x32xf32>
    %c0_35 = arith.constant 0 : index
    %c0_36 = arith.constant 0 : index
    %c0_37 = arith.constant 0 : index
    %40 = vector.load %arg39[%c0_35, %c0_36, %c0_37] : memref<1x1x32xf32, #tpu.memory_space<vmem>>, vector<1x1x32xf32>
    %41 = vector.shape_cast %40 : vector<1x1x32xf32> to vector<1x32xf32>
    %42 = vector.broadcast %41 : vector<1x32xf32> to vector<32x32xf32>
    %43 = arith.addf %39, %42 : vector<32x32xf32>
    %c0_38 = arith.constant 0 : index
    %c0_39 = arith.constant 0 : index
    %44 = vector.load %arg59[%c0_38, %c0_39] : memref<32x32xf32, #tpu.memory_space<vmem>>, vector<32x32xf32>
    tpu.vector_store %arg59[%c0_38, %c0_39], %43 {strides = array<i32>} : memref<32x32xf32, #tpu.memory_space<vmem>>, vector<32x32xf32>,
    %45 = arith.truncf %43 : vector<32x32xf32> to vector<32x32xbf16>
    %cst_40 = arith.constant dense<0.000000e+00> : vector<16x32xf32>
    %46 = tpu.matmul %9, %45, %cst_40 {dimension_numbers = #tpu.dot_dimension_numbers<[0], [0], [1], [1], [0, 1, 1, 1], [], []>} : vector<32x16xbf16>, vector<32x32xbf16>, vector<16x32xf32> -> vector<16x32xf32>
    %c0_41 = arith.constant 0 : index
    %c0_42 = arith.constant 0 : index
    %47 = vector.load %arg9[%c0_41, %c0_42] : memref<16x1xf32, #tpu.memory_space<vmem>>, vector<16x1xf32>
    %48 = vector.broadcast %47 : vector<16x1xf32> to vector<16x32xf32>
    %49 = arith.mulf %46, %48 : vector<16x32xf32>
    %c0_43 = arith.constant 0 : index
    %c0_44 = arith.constant 0 : index
    %c0_45 = arith.constant 0 : index
    %50 = vector.load %arg40[%c0_43, %c0_44, %c0_45] : memref<1x32x32xbf16, #tpu.memory_space<vmem>>, vector<1x32x32xbf16>
    %51 = vector.shape_cast %50 : vector<1x32x32xbf16> to vector<32x32xbf16>
    %cst_46 = arith.constant dense<0.000000e+00> : vector<16x32xf32>
    %52 = tpu.matmul %4, %51, %cst_46 {dimension_numbers = #tpu.dot_dimension_numbers<[1], [0], [0], [1], [0, 0, 1, 1], [], []>} : vector<16x32xbf16>, vector<32x32xbf16>, vector<16x32xf32> -> vector<16x32xf32>
    %53 = arith.truncf %49 : vector<16x32xf32> to vector<16x32xbf16>
    %c0_47 = arith.constant 0 : index
    %c0_48 = arith.constant 0 : index
    %c0_49 = arith.constant 0 : index
    %54 = vector.load %arg41[%c0_47, %c0_48, %c0_49] : memref<1x32x32xbf16, #tpu.memory_space<vmem>>, vector<1x32x32xbf16>
    %55 = vector.shape_cast %54 : vector<1x32x32xbf16> to vector<32x32xbf16>
    %cst_50 = arith.constant dense<0.000000e+00> : vector<16x32xf32>
    %56 = tpu.matmul %53, %55, %cst_50 {dimension_numbers = #tpu.dot_dimension_numbers<[1], [0], [0], [1], [0, 0, 1, 1], [], []>} : vector<16x32xbf16>, vector<32x32xbf16>, vector<16x32xf32> -> vector<16x32xf32>
    %57 = arith.addf %52, %56 : vector<16x32xf32>
    %c0_51 = arith.constant 0 : index
    %c0_52 = arith.constant 0 : index
    %c0_53 = arith.constant 0 : index
    %58 = vector.load %arg42[%c0_51, %c0_52, %c0_53] : memref<1x32x32xbf16, #tpu.memory_space<vmem>>, vector<1x32x32xbf16>
    %59 = vector.shape_cast %58 : vector<1x32x32xbf16> to vector<32x32xbf16>
    %cst_54 = arith.constant dense<0.000000e+00> : vector<16x32xf32>
    %60 = tpu.matmul %8, %59, %cst_54 {dimension_numbers = #tpu.dot_dimension_numbers<[1], [0], [0], [1], [0, 0, 1, 1], [], []>} : vector<16x32xbf16>, vector<32x32xbf16>, vector<16x32xf32> -> vector<16x32xf32>
    %61 = arith.addf %57, %60 : vector<16x32xf32>
    %c0_55 = arith.constant 0 : index
    %c0_56 = arith.constant 0 : index
    %c0_57 = arith.constant 0 : index
    %62 = vector.load %arg43[%c0_55, %c0_56, %c0_57] : memref<1x1x32xf32, #tpu.memory_space<vmem>>, vector<1x1x32xf32>
    %63 = vector.shape_cast %62 : vector<1x1x32xf32> to vector<1x32xf32>
    %64 = vector.broadcast %63 : vector<1x32xf32> to vector<16x32xf32>
    %65 = arith.addf %61, %64 : vector<16x32xf32>
    %cst_58 = arith.constant 0.000000e+00 : f32
    %66 = vector.broadcast %cst_58 : f32 to vector<16x32xf32>
    %67 = arith.maximumf %65, %66 : vector<16x32xf32>
    %68 = arith.truncf %67 : vector<16x32xf32> to vector<16x32xbf16>
    %c0_59 = arith.constant 0 : index
    %c0_60 = arith.constant 0 : index
    %c0_61 = arith.constant 0 : index
    %69 = vector.load %arg44[%c0_59, %c0_60, %c0_61] : memref<1x32x32xbf16, #tpu.memory_space<vmem>>, vector<1x32x32xbf16>
    %70 = vector.shape_cast %69 : vector<1x32x32xbf16> to vector<32x32xbf16>
    %cst_62 = arith.constant dense<0.000000e+00> : vector<16x32xf32>
    %71 = tpu.matmul %68, %70, %cst_62 {dimension_numbers = #tpu.dot_dimension_numbers<[1], [0], [0], [1], [0, 0, 1, 1], [], []>} : vector<16x32xbf16>, vector<32x32xbf16>, vector<16x32xf32> -> vector<16x32xf32>
    %c0_63 = arith.constant 0 : index
    %c0_64 = arith.constant 0 : index
    %c0_65 = arith.constant 0 : index
    %72 = vector.load %arg45[%c0_63, %c0_64, %c0_65] : memref<1x1x32xf32, #tpu.memory_space<vmem>>, vector<1x1x32xf32>
    %73 = vector.shape_cast %72 : vector<1x1x32xf32> to vector<1x32xf32>
    %74 = vector.broadcast %73 : vector<1x32xf32> to vector<16x32xf32>
    %75 = arith.addf %71, %74 : vector<16x32xf32>
    %76 = arith.addf %75, %3 : vector<16x32xf32>
    %c0_66 = arith.constant 0 : index
    %c0_67 = arith.constant 0 : index
    %77 = vector.load %arg58[%c0_66, %c0_67] : memref<16x32xf32, #tpu.memory_space<vmem>>, vector<16x32xf32>
    tpu.vector_store %arg58[%c0_66, %c0_67], %76 {strides = array<i32>} : memref<16x32xf32, #tpu.memory_space<vmem>>, vector<16x32xf32>,
    %c1_i32 = arith.constant 1 : i32
    %78 = arith.cmpi eq, %arg0, %c1_i32 : i32
    %79 = arith.extui %78 : i1 to i32
    %c0_i32_68 = arith.constant 0 : i32
    %80 = arith.cmpi ne, %79, %c0_i32_68 : i32
    scf.if %80 {
      %c0_69 = arith.constant 0 : index
      %c0_70 = arith.constant 0 : index
      %81 = vector.load %arg60[%c0_69, %c0_70] : memref<2x32xf32, #tpu.memory_space<vmem>>, vector<2x32xf32>
      %c0_71 = arith.constant 0 : index
      %c0_72 = arith.constant 0 : index
      %82 = vector.load %arg8[%c0_71, %c0_72] : memref<2x16xbf16, #tpu.memory_space<vmem>>, vector<2x16xbf16>
      %83 = arith.truncf %76 : vector<16x32xf32> to vector<16x32xbf16>
      %cst_73 = arith.constant dense<0.000000e+00> : vector<2x32xf32>
      %84 = tpu.matmul %82, %83, %cst_73 {dimension_numbers = #tpu.dot_dimension_numbers<[1], [0], [0], [1], [0, 0, 1, 1], [], []>} : vector<2x16xbf16>, vector<16x32xbf16>, vector<2x32xf32> -> vector<2x32xf32>
      %c0_74 = arith.constant 0 : index
      %c0_75 = arith.constant 0 : index
      %85 = vector.load %arg10[%c0_74, %c0_75] : memref<2x1xf32, #tpu.memory_space<vmem>>, vector<2x1xf32>
      %86 = vector.broadcast %85 : vector<2x1xf32> to vector<2x32xf32>
      %87 = arith.mulf %84, %86 : vector<2x32xf32>
      %c0_76 = arith.constant 0 : index
      %c0_77 = arith.constant 0 : index
      %88 = vector.load %arg8[%c0_76, %c0_77] : memref<2x16xbf16, #tpu.memory_space<vmem>>, vector<2x16xbf16>
      %89 = arith.truncf %46 : vector<16x32xf32> to vector<16x32xbf16>
      %cst_78 = arith.constant dense<0.000000e+00> : vector<2x32xf32>
      %90 = tpu.matmul %88, %89, %cst_78 {dimension_numbers = #tpu.dot_dimension_numbers<[1], [0], [0], [1], [0, 0, 1, 1], [], []>} : vector<2x16xbf16>, vector<16x32xbf16>, vector<2x32xf32> -> vector<2x32xf32>
      %c0_79 = arith.constant 0 : index
      %c0_80 = arith.constant 0 : index
      %91 = vector.load %arg11[%c0_79, %c0_80] : memref<2x1xf32, #tpu.memory_space<vmem>>, vector<2x1xf32>
      %92 = vector.broadcast %91 : vector<2x1xf32> to vector<2x32xf32>
      %93 = arith.mulf %90, %92 : vector<2x32xf32>
      %94 = arith.truncf %87 : vector<2x32xf32> to vector<2x32xbf16>
      %c0_81 = arith.constant 0 : index
      %c0_82 = arith.constant 0 : index
      %95 = vector.load %arg50[%c0_81, %c0_82] : memref<32x32xbf16, #tpu.memory_space<vmem>>, vector<32x32xbf16>
      %cst_83 = arith.constant dense<0.000000e+00> : vector<2x32xf32>
      %96 = tpu.matmul %94, %95, %cst_83 {dimension_numbers = #tpu.dot_dimension_numbers<[1], [0], [0], [1], [0, 0, 1, 1], [], []>} : vector<2x32xbf16>, vector<32x32xbf16>, vector<2x32xf32> -> vector<2x32xf32>
      %97 = arith.truncf %93 : vector<2x32xf32> to vector<2x32xbf16>
      %c0_84 = arith.constant 0 : index
      %c0_85 = arith.constant 0 : index
      %98 = vector.load %arg51[%c0_84, %c0_85] : memref<32x32xbf16, #tpu.memory_space<vmem>>, vector<32x32xbf16>
      %cst_86 = arith.constant dense<0.000000e+00> : vector<2x32xf32>
      %99 = tpu.matmul %97, %98, %cst_86 {dimension_numbers = #tpu.dot_dimension_numbers<[1], [0], [0], [1], [0, 0, 1, 1], [], []>} : vector<2x32xbf16>, vector<32x32xbf16>, vector<2x32xf32> -> vector<2x32xf32>
      %100 = arith.addf %96, %99 : vector<2x32xf32>
      %101 = arith.truncf %81 : vector<2x32xf32> to vector<2x32xbf16>
      %c0_87 = arith.constant 0 : index
      %c0_88 = arith.constant 0 : index
      %102 = vector.load %arg52[%c0_87, %c0_88] : memref<32x32xbf16, #tpu.memory_space<vmem>>, vector<32x32xbf16>
      %cst_89 = arith.constant dense<0.000000e+00> : vector<2x32xf32>
      %103 = tpu.matmul %101, %102, %cst_89 {dimension_numbers = #tpu.dot_dimension_numbers<[1], [0], [0], [1], [0, 0, 1, 1], [], []>} : vector<2x32xbf16>, vector<32x32xbf16>, vector<2x32xf32> -> vector<2x32xf32>
      %104 = arith.addf %100, %103 : vector<2x32xf32>
      %c0_90 = arith.constant 0 : index
      %c0_91 = arith.constant 0 : index
      %105 = vector.load %arg53[%c0_90, %c0_91] : memref<1x32xf32, #tpu.memory_space<vmem>>, vector<1x32xf32>
      %106 = vector.broadcast %105 : vector<1x32xf32> to vector<2x32xf32>
      %107 = arith.addf %104, %106 : vector<2x32xf32>
      %cst_92 = arith.constant 0.000000e+00 : f32
      %108 = vector.broadcast %cst_92 : f32 to vector<2x32xf32>
      %109 = arith.maximumf %107, %108 : vector<2x32xf32>
      %110 = arith.truncf %109 : vector<2x32xf32> to vector<2x32xbf16>
      %c0_93 = arith.constant 0 : index
      %c0_94 = arith.constant 0 : index
      %111 = vector.load %arg54[%c0_93, %c0_94] : memref<32x2xbf16, #tpu.memory_space<vmem>>, vector<32x2xbf16>
      %cst_95 = arith.constant dense<0.000000e+00> : vector<2x2xf32>
      %112 = tpu.matmul %110, %111, %cst_95 {dimension_numbers = #tpu.dot_dimension_numbers<[1], [0], [0], [1], [0, 0, 1, 1], [], []>} : vector<2x32xbf16>, vector<32x2xbf16>, vector<2x2xf32> -> vector<2x2xf32>
      %c0_96 = arith.constant 0 : index
      %c0_97 = arith.constant 0 : index
      %113 = vector.load %arg55[%c0_96, %c0_97] : memref<1x2xf32, #tpu.memory_space<vmem>>, vector<1x2xf32>
      %114 = vector.broadcast %113 : vector<1x2xf32> to vector<2x2xf32>
      %115 = arith.addf %112, %114 : vector<2x2xf32>
      %c0_98 = arith.constant 0 : index
      %c0_99 = arith.constant 0 : index
      %116 = vector.load %arg57[%c0_98, %c0_99] : memref<2x2xf32, #tpu.memory_space<vmem>>, vector<2x2xf32>
      tpu.vector_store %arg57[%c0_98, %c0_99], %115 {strides = array<i32>} : memref<2x2xf32, #tpu.memory_space<vmem>>, vector<2x2xf32>,
      %117 = arith.truncf %76 : vector<16x32xf32> to vector<16x32xbf16>
      %c0_100 = arith.constant 0 : index
      %c0_101 = arith.constant 0 : index
      %118 = vector.load %arg46[%c0_100, %c0_101] : memref<32x32xbf16, #tpu.memory_space<vmem>>, vector<32x32xbf16>
      %cst_102 = arith.constant dense<0.000000e+00> : vector<16x32xf32>
      %119 = tpu.matmul %117, %118, %cst_102 {dimension_numbers = #tpu.dot_dimension_numbers<[1], [0], [0], [1], [0, 0, 1, 1], [], []>} : vector<16x32xbf16>, vector<32x32xbf16>, vector<16x32xf32> -> vector<16x32xf32>
      %c0_103 = arith.constant 0 : index
      %c0_104 = arith.constant 0 : index
      %120 = vector.load %arg47[%c0_103, %c0_104] : memref<1x32xf32, #tpu.memory_space<vmem>>, vector<1x32xf32>
      %121 = vector.broadcast %120 : vector<1x32xf32> to vector<16x32xf32>
      %122 = arith.addf %119, %121 : vector<16x32xf32>
      %cst_105 = arith.constant 0.000000e+00 : f32
      %123 = vector.broadcast %cst_105 : f32 to vector<16x32xf32>
      %124 = arith.maximumf %122, %123 : vector<16x32xf32>
      %125 = arith.truncf %124 : vector<16x32xf32> to vector<16x32xbf16>
      %c0_106 = arith.constant 0 : index
      %c0_107 = arith.constant 0 : index
      %126 = vector.load %arg48[%c0_106, %c0_107] : memref<32x4xbf16, #tpu.memory_space<vmem>>, vector<32x4xbf16>
      %cst_108 = arith.constant dense<0.000000e+00> : vector<16x4xf32>
      %127 = tpu.matmul %125, %126, %cst_108 {dimension_numbers = #tpu.dot_dimension_numbers<[1], [0], [0], [1], [0, 0, 1, 1], [], []>} : vector<16x32xbf16>, vector<32x4xbf16>, vector<16x4xf32> -> vector<16x4xf32>
      %c0_109 = arith.constant 0 : index
      %c0_110 = arith.constant 0 : index
      %128 = vector.load %arg49[%c0_109, %c0_110] : memref<1x4xf32, #tpu.memory_space<vmem>>, vector<1x4xf32>
      %129 = vector.broadcast %128 : vector<1x4xf32> to vector<16x4xf32>
      %130 = arith.addf %127, %129 : vector<16x4xf32>
      %c0_111 = arith.constant 0 : index
      %c0_112 = arith.constant 0 : index
      %131 = vector.load %arg56[%c0_111, %c0_112] : memref<16x4xf32, #tpu.memory_space<vmem>>, vector<16x4xf32>
      tpu.vector_store %arg56[%c0_111, %c0_112], %130 {strides = array<i32>} : memref<16x4xf32, #tpu.memory_space<vmem>>, vector<16x4xf32>,
    } else {
    }
    return
  }
  func.func @transform_0(%arg0: i32) -> (i32, i32) {
    %c0_i32 = arith.constant 0 : i32
    %c0_i32_0 = arith.constant 0 : i32
    %c0_i32_1 = arith.constant 0 : i32
    return %c0_i32, %c0_i32_0 : i32, i32
  }
  func.func @transform_1(%arg0: i32) -> (i32, i32) {
    %c0_i32 = arith.constant 0 : i32
    %c0_i32_0 = arith.constant 0 : i32
    %c0_i32_1 = arith.constant 0 : i32
    return %c0_i32, %c0_i32_0 : i32, i32
  }
  func.func @transform_2(%arg0: i32) -> (i32, i32) {
    %c0_i32 = arith.constant 0 : i32
    %c0_i32_0 = arith.constant 0 : i32
    %c0_i32_1 = arith.constant 0 : i32
    return %c0_i32, %c0_i32_0 : i32, i32
  }
  func.func @transform_3(%arg0: i32) -> (i32, i32) {
    %c0_i32 = arith.constant 0 : i32
    %c0_i32_0 = arith.constant 0 : i32
    %c0_i32_1 = arith.constant 0 : i32
    return %c0_i32, %c0_i32_0 : i32, i32
  }
  func.func @transform_4(%arg0: i32) -> (i32, i32) {
    %c0_i32 = arith.constant 0 : i32
    %c0_i32_0 = arith.constant 0 : i32
    %c0_i32_1 = arith.constant 0 : i32
    return %c0_i32, %c0_i32_0 : i32, i32
  }
  func.func @transform_5(%arg0: i32) -> (i32, i32) {
    %c0_i32 = arith.constant 0 : i32
    %c0_i32_0 = arith.constant 0 : i32
    %c0_i32_1 = arith.constant 0 : i32
    return %c0_i32, %c0_i32_0 : i32, i32
  }
  func.func @transform_6(%arg0: i32) -> (i32, i32) {
    %c0_i32 = arith.constant 0 : i32
    %c0_i32_0 = arith.constant 0 : i32
    %c0_i32_1 = arith.constant 0 : i32
    return %c0_i32, %c0_i32_0 : i32, i32
  }
  func.func @transform_7(%arg0: i32) -> (i32, i32) {
    %c0_i32 = arith.constant 0 : i32
    %c0_i32_0 = arith.constant 0 : i32
    %c0_i32_1 = arith.constant 0 : i32
    return %c0_i32, %c0_i32_0 : i32, i32
  }
  func.func @transform_8(%arg0: i32) -> (i32, i32) {
    %c0_i32 = arith.constant 0 : i32
    %c0_i32_0 = arith.constant 0 : i32
    %c0_i32_1 = arith.constant 0 : i32
    return %c0_i32, %c0_i32_0 : i32, i32
  }
  func.func @transform_9(%arg0: i32) -> (i32, i32) {
    %c0_i32 = arith.constant 0 : i32
    %c0_i32_0 = arith.constant 0 : i32
    %c0_i32_1 = arith.constant 0 : i32
    return %c0_i32, %c0_i32_0 : i32, i32
  }
  func.func @transform_10(%arg0: i32) -> (i32, i32) {
    %c0_i32 = arith.constant 0 : i32
    %c0_i32_0 = arith.constant 0 : i32
    %c0_i32_1 = arith.constant 0 : i32
    return %c0_i32, %c0_i32_0 : i32, i32
  }
  func.func @transform_11(%arg0: i32) -> (i32, i32) {
    %c0_i32 = arith.constant 0 : i32
    %c0_i32_0 = arith.constant 0 : i32
    %c0_i32_1 = arith.constant 0 : i32
    return %c0_i32, %c0_i32_0 : i32, i32
  }
  func.func @transform_12(%arg0: i32) -> (i32, i32) {
    %c0_i32 = arith.constant 0 : i32
    %c0_i32_0 = arith.constant 0 : i32
    %c0_i32_1 = arith.constant 0 : i32
    return %c0_i32, %c0_i32_0 : i32, i32
  }
  func.func @transform_13(%arg0: i32) -> (i32, i32) {
    %c0_i32 = arith.constant 0 : i32
    %c0_i32_0 = arith.constant 0 : i32
    %c0_i32_1 = arith.constant 0 : i32
    return %c0_i32, %c0_i32_0 : i32, i32
  }
  func.func @transform_14(%arg0: i32) -> (i32, i32) {
    %c0_i32 = arith.constant 0 : i32
    %c0_i32_0 = arith.constant 0 : i32
    %c0_i32_1 = arith.constant 0 : i32
    return %c0_i32, %c0_i32_0 : i32, i32
  }
  func.func @transform_15(%arg0: i32) -> (i32, i32) {
    %c0_i32 = arith.constant 0 : i32
    %c0_i32_0 = arith.constant 0 : i32
    %c0_i32_1 = arith.constant 0 : i32
    return %c0_i32, %c0_i32_0 : i32, i32
  }
  func.func @transform_16(%arg0: i32) -> (i32, i32) {
    %c0_i32 = arith.constant 0 : i32
    %c0_i32_0 = arith.constant 0 : i32
    %c0_i32_1 = arith.constant 0 : i32
    return %c0_i32, %c0_i32_0 : i32, i32
  }
  func.func @transform_17(%arg0: i32) -> (i32, i32) {
    %c0_i32 = arith.constant 0 : i32
    %c0_i32_0 = arith.constant 0 : i32
    %c0_i32_1 = arith.constant 0 : i32
    return %c0_i32, %c0_i32_0 : i32, i32
  }
  func.func @transform_18(%arg0: i32) -> (i32, i32) {
    %c0_i32 = arith.constant 0 : i32
    %c0_i32_0 = arith.constant 0 : i32
    %c0_i32_1 = arith.constant 0 : i32
    return %c0_i32, %c0_i32_0 : i32, i32
  }
  func.func @transform_19(%arg0: i32) -> (i32, i32) {
    %c0_i32 = arith.constant 0 : i32
    %c0_i32_0 = arith.constant 0 : i32
    %c0_i32_1 = arith.constant 0 : i32
    return %c0_i32, %c0_i32_0 : i32, i32
  }
  func.func @transform_20(%arg0: i32) -> (i32, i32) {
    %c0_i32 = arith.constant 0 : i32
    %c0_i32_0 = arith.constant 0 : i32
    %c0_i32_1 = arith.constant 0 : i32
    return %c0_i32, %c0_i32_0 : i32, i32
  }
  func.func @transform_21(%arg0: i32) -> (i32, i32) {
    %c0_i32 = arith.constant 0 : i32
    %c0_i32_0 = arith.constant 0 : i32
    %c0_i32_1 = arith.constant 0 : i32
    return %c0_i32, %c0_i32_0 : i32, i32
  }
  func.func @transform_22(%arg0: i32) -> (i32, i32) {
    %c0_i32 = arith.constant 0 : i32
    %c0_i32_0 = arith.constant 0 : i32
    %c0_i32_1 = arith.constant 0 : i32
    return %c0_i32, %c0_i32_0 : i32, i32
  }
  func.func @transform_23(%arg0: i32) -> (i32, i32) {
    %c0_i32 = arith.constant 0 : i32
    %c0_i32_0 = arith.constant 0 : i32
    %c0_i32_1 = arith.constant 0 : i32
    return %c0_i32, %c0_i32_0 : i32, i32
  }
  func.func @transform_24(%arg0: i32) -> (i32, i32) {
    %c0_i32 = arith.constant 0 : i32
    %c0_i32_0 = arith.constant 0 : i32
    %c0_i32_1 = arith.constant 0 : i32
    return %c0_i32, %c0_i32_0 : i32, i32
  }
  func.func @transform_25(%arg0: i32) -> (i32, i32) {
    %c0_i32 = arith.constant 0 : i32
    %c0_i32_0 = arith.constant 0 : i32
    %c0_i32_1 = arith.constant 0 : i32
    return %c0_i32, %c0_i32_0 : i32, i32
  }
  func.func @transform_26(%arg0: i32) -> (i32, i32) {
    %c0_i32 = arith.constant 0 : i32
    %c0_i32_0 = arith.constant 0 : i32
    %c0_i32_1 = arith.constant 0 : i32
    return %c0_i32, %c0_i32_0 : i32, i32
  }
  func.func @transform_27(%arg0: i32) -> (i32, i32) {
    %c0_i32 = arith.constant 0 : i32
    %c0_i32_0 = arith.constant 0 : i32
    %c0_i32_1 = arith.constant 0 : i32
    return %c0_i32, %c0_i32_0 : i32, i32
  }
  func.func @transform_28(%arg0: i32) -> (i32, i32) {
    %c0_i32 = arith.constant 0 : i32
    %c0_i32_0 = arith.constant 0 : i32
    %c0_i32_1 = arith.constant 0 : i32
    return %c0_i32, %c0_i32_0 : i32, i32
  }
  func.func @transform_29(%arg0: i32) -> (i32, i32) {
    %c0_i32 = arith.constant 0 : i32
    %c0_i32_0 = arith.constant 0 : i32
    %c0_i32_1 = arith.constant 0 : i32
    return %c0_i32, %c0_i32_0 : i32, i32
  }
  func.func @transform_30(%arg0: i32) -> (i32, i32) {
    %c0_i32 = arith.constant 0 : i32
    %c0_i32_0 = arith.constant 0 : i32
    %c0_i32_1 = arith.constant 0 : i32
    return %c0_i32, %c0_i32_0 : i32, i32
  }
  func.func @transform_31(%arg0: i32) -> (i32, i32) {
    %c0_i32 = arith.constant 0 : i32
    %c0_i32_0 = arith.constant 0 : i32
    %c0_i32_1 = arith.constant 0 : i32
    return %c0_i32, %c0_i32_0 : i32, i32
  }
  func.func @transform_32(%arg0: i32) -> (i32, i32, i32) {
    %c0_i32 = arith.constant 0 : i32
    %c0_i32_0 = arith.constant 0 : i32
    %c0_i32_1 = arith.constant 0 : i32
    return %arg0, %c0_i32, %c0_i32_0 : i32, i32, i32
  }
  func.func @transform_33(%arg0: i32) -> (i32, i32, i32) {
    %c0_i32 = arith.constant 0 : i32
    %c0_i32_0 = arith.constant 0 : i32
    %c0_i32_1 = arith.constant 0 : i32
    return %arg0, %c0_i32, %c0_i32_0 : i32, i32, i32
  }
  func.func @transform_34(%arg0: i32) -> (i32, i32, i32) {
    %c0_i32 = arith.constant 0 : i32
    %c0_i32_0 = arith.constant 0 : i32
    %c0_i32_1 = arith.constant 0 : i32
    return %arg0, %c0_i32, %c0_i32_0 : i32, i32, i32
  }
  func.func @transform_35(%arg0: i32) -> (i32, i32, i32) {
    %c0_i32 = arith.constant 0 : i32
    %c0_i32_0 = arith.constant 0 : i32
    %c0_i32_1 = arith.constant 0 : i32
    return %arg0, %c0_i32, %c0_i32_0 : i32, i32, i32
  }
  func.func @transform_36(%arg0: i32) -> (i32, i32, i32) {
    %c0_i32 = arith.constant 0 : i32
    %c0_i32_0 = arith.constant 0 : i32
    %c0_i32_1 = arith.constant 0 : i32
    return %arg0, %c0_i32, %c0_i32_0 : i32, i32, i32
  }
  func.func @transform_37(%arg0: i32) -> (i32, i32, i32) {
    %c0_i32 = arith.constant 0 : i32
    %c0_i32_0 = arith.constant 0 : i32
    %c0_i32_1 = arith.constant 0 : i32
    return %arg0, %c0_i32, %c0_i32_0 : i32, i32, i32
  }
  func.func @transform_38(%arg0: i32) -> (i32, i32, i32) {
    %c0_i32 = arith.constant 0 : i32
    %c0_i32_0 = arith.constant 0 : i32
    %c0_i32_1 = arith.constant 0 : i32
    return %arg0, %c0_i32, %c0_i32_0 : i32, i32, i32
  }
  func.func @transform_39(%arg0: i32) -> (i32, i32, i32) {
    %c0_i32 = arith.constant 0 : i32
    %c0_i32_0 = arith.constant 0 : i32
    %c0_i32_1 = arith.constant 0 : i32
    return %arg0, %c0_i32, %c0_i32_0 : i32, i32, i32
  }
  func.func @transform_40(%arg0: i32) -> (i32, i32, i32) {
    %c0_i32 = arith.constant 0 : i32
    %c0_i32_0 = arith.constant 0 : i32
    %c0_i32_1 = arith.constant 0 : i32
    return %arg0, %c0_i32, %c0_i32_0 : i32, i32, i32
  }
  func.func @transform_41(%arg0: i32) -> (i32, i32, i32) {
    %c0_i32 = arith.constant 0 : i32
    %c0_i32_0 = arith.constant 0 : i32
    %c0_i32_1 = arith.constant 0 : i32
    return %arg0, %c0_i32, %c0_i32_0 : i32, i32, i32
  }
  func.func @transform_42(%arg0: i32) -> (i32, i32, i32) {
    %c0_i32 = arith.constant 0 : i32
    %c0_i32_0 = arith.constant 0 : i32
    %c0_i32_1 = arith.constant 0 : i32
    return %arg0, %c0_i32, %c0_i32_0 : i32, i32, i32
  }
  func.func @transform_43(%arg0: i32) -> (i32, i32, i32) {
    %c0_i32 = arith.constant 0 : i32
    %c0_i32_0 = arith.constant 0 : i32
    %c0_i32_1 = arith.constant 0 : i32
    return %arg0, %c0_i32, %c0_i32_0 : i32, i32, i32
  }
  func.func @transform_44(%arg0: i32) -> (i32, i32, i32) {
    %c0_i32 = arith.constant 0 : i32
    %c0_i32_0 = arith.constant 0 : i32
    %c0_i32_1 = arith.constant 0 : i32
    return %arg0, %c0_i32, %c0_i32_0 : i32, i32, i32
  }
  func.func @transform_45(%arg0: i32) -> (i32, i32) {
    %c0_i32 = arith.constant 0 : i32
    %c0_i32_0 = arith.constant 0 : i32
    %c0_i32_1 = arith.constant 0 : i32
    return %c0_i32, %c0_i32_0 : i32, i32
  }
  func.func @transform_46(%arg0: i32) -> (i32, i32) {
    %c0_i32 = arith.constant 0 : i32
    %c0_i32_0 = arith.constant 0 : i32
    %c0_i32_1 = arith.constant 0 : i32
    return %c0_i32, %c0_i32_0 : i32, i32
  }
  func.func @transform_47(%arg0: i32) -> (i32, i32) {
    %c0_i32 = arith.constant 0 : i32
    %c0_i32_0 = arith.constant 0 : i32
    %c0_i32_1 = arith.constant 0 : i32
    return %c0_i32, %c0_i32_0 : i32, i32
  }
  func.func @transform_48(%arg0: i32) -> (i32, i32) {
    %c0_i32 = arith.constant 0 : i32
    %c0_i32_0 = arith.constant 0 : i32
    %c0_i32_1 = arith.constant 0 : i32
    return %c0_i32, %c0_i32_0 : i32, i32
  }
  func.func @transform_49(%arg0: i32) -> (i32, i32) {
    %c0_i32 = arith.constant 0 : i32
    %c0_i32_0 = arith.constant 0 : i32
    %c0_i32_1 = arith.constant 0 : i32
    return %c0_i32, %c0_i32_0 : i32, i32
  }
  func.func @transform_50(%arg0: i32) -> (i32, i32) {
    %c0_i32 = arith.constant 0 : i32
    %c0_i32_0 = arith.constant 0 : i32
    %c0_i32_1 = arith.constant 0 : i32
    return %c0_i32, %c0_i32_0 : i32, i32
  }
  func.func @transform_51(%arg0: i32) -> (i32, i32) {
    %c0_i32 = arith.constant 0 : i32
    %c0_i32_0 = arith.constant 0 : i32
    %c0_i32_1 = arith.constant 0 : i32
    return %c0_i32, %c0_i32_0 : i32, i32
  }
  func.func @transform_52(%arg0: i32) -> (i32, i32) {
    %c0_i32 = arith.constant 0 : i32
    %c0_i32_0 = arith.constant 0 : i32
    %c0_i32_1 = arith.constant 0 : i32
    return %c0_i32, %c0_i32_0 : i32, i32
  }
  func.func @transform_53(%arg0: i32) -> (i32, i32) {
    %c0_i32 = arith.constant 0 : i32
    %c0_i32_0 = arith.constant 0 : i32
    %c0_i32_1 = arith.constant 0 : i32
    return %c0_i32, %c0_i32_0 : i32, i32
  }
  func.func @transform_54(%arg0: i32) -> (i32, i32) {
    %c0_i32 = arith.constant 0 : i32
    %c0_i32_0 = arith.constant 0 : i32
    %c0_i32_1 = arith.constant 0 : i32
    return %c0_i32, %c0_i32_0 : i32, i32
  }
  func.func @transform_55(%arg0: i32) -> (i32, i32) {
    %c0_i32 = arith.constant 0 : i32
    %c0_i32_0 = arith.constant 0 : i32
    %c0_i32_1 = arith.constant 0 : i32
    return %c0_i32, %c0_i32_0 : i32, i32
  }
  func.func @transform_56(%arg0: i32) -> (i32, i32) {
    %c0_i32 = arith.constant 0 : i32
    %c0_i32_0 = arith.constant 0 : i32
    %c0_i32_1 = arith.constant 0 : i32
    return %c0_i32, %c0_i32_0 : i32, i32
  }
}

</mosaic_0001>

<bundles_post_ra>
// kernel: forward.1
= control target key start
LH: loop header
LB: loop body
LE: loop exit
PB: predicated region body
PF: predicated region fallthrough
CT: control target
= control target key end

     0   :  { %s4914_s6 = smov 1   ;;  %s4915_s10 = smov 2   ;;  %s5611_s0 = inlined_call_operand.smem [shape: u32[57], index: -1, kind: input, shape index: {}] }
   0x1   :  { %s4988_s5 = sld [smem:[%s5611_s0]]   ;;  %s4916_s14 = smov 3  }
   0x2   :  { %s4993_s9 = sld [smem:[%s5611_s0 + %s4914_s6]]   ;;  %s4917_s18 = smov 4  }
   0x3   :  { %s4998_s13 = sld [smem:[%s5611_s0 + %s4915_s10]]   ;;  %s4918_s22 = smov 5  }
   0x4   :  { %s5003_s17 = sld [smem:[%s5611_s0 + %s4916_s14]]   ;;  %s4919_s26 = smov 6  }
   0x5   :  { %s5008_s21 = sld [smem:[%s5611_s0 + %s4917_s18]]   ;;  %s4920_s30 = smov 7  }
   0x6   :  { %s5013_s25 = sld [smem:[%s5611_s0 + %s4918_s22]]   ;;  %s4921_s4 = smov 8  }
   0x7   :  { %5637 = sst [smem:[#allocation9_spill]] %s4988_s5  ;;  %s4922_s10 = smov 9  }
   0x8   :  { %5638 = sst [smem:[#allocation10_spill]] %s4993_s9  ;;  %s4923_s15 = smov 10  }
   0x9   :  { %5639 = sst [smem:[#allocation11_spill]] %s4998_s13  ;;  %s4924_s20 = smov 11  }
   0xa   :  { %5640 = sst [smem:[#allocation12_spill]] %s5003_s17  ;;  %s4926_s1 = smov 13  }
   0xb   :  { %5641 = sst [smem:[#allocation13_spill]] %s5008_s21  ;;  %s4927_s7 = smov 14  }
   0xc   :  { %5642 = sst [smem:[#allocation14_spill]] %s5013_s25  ;;  %s4929_s22 = smov 16  }
   0xd   :  { %s5018_s29 = sld [smem:[%s5611_s0 + %s4919_s26]]   ;;  %s4925_s26 = smov 12  }
   0xe   :  { %s5023_s3 = sld [smem:[%s5611_s0 + %s4920_s30]]   ;;  %s4930_s28 = smov 17  }
   0xf   :  { %s5028_s8 = sld [smem:[%s5611_s0 + %s4921_s4]]  }
  0x10   :  { %s5033_s14 = sld [smem:[%s5611_s0 + %s4922_s10]]  }
  0x11   :  { %s5038_s19 = sld [smem:[%s5611_s0 + %s4923_s15]]   ;;  %s4928_s15 = smov 15  }
  0x12   :  { %s5043_s24 = sld [smem:[%s5611_s0 + %s4924_s20]]  }
  0x13   :  { %5643 = sst [smem:[#allocation15_spill]] %s5018_s29 }
  0x14   :  { %5644 = sst [smem:[#allocation16_spill]] %s5023_s3 }
  0x15   :  { %5645 = sst [smem:[#allocation17_spill]] %s5028_s8 }
  0x16   :  { %5646 = sst [smem:[#allocation18_spill]] %s5033_s14 }
  0x17   :  { %5647 = sst [smem:[#allocation19_spill]] %s5038_s19 }
  0x18   :  { %s5048_s30 = sld [smem:[%s5611_s0 + %s4925_s26]]  }
  0x19   :  { %s5053_s6 = sld [smem:[%s5611_s0 + %s4926_s1]]  }
  0x1a   :  { %s5058_s12 = sld [smem:[%s5611_s0 + %s4927_s7]]   ;;  %s4931_s7 = smov 18  }
  0x1b   :  { %s5063_s20 = sld [smem:[%s5611_s0 + %s4928_s15]]   ;;  %s4932_s15 = smov 19  }
  0x1c   :  { %s5068_s27 = sld [smem:[%s5611_s0 + %s4929_s22]]   ;;  %s4933_s22 = smov 20  }
  0x1d   :  { %s5073_s4 = sld [smem:[%s5611_s0 + %s4930_s28]]   ;;  %s4934_s28 = smov 21  }
  0x1e   :  { %5648 = sst [smem:[#allocation20_spill]] %s5048_s30 }
  0x1f   :  { %5649 = sst [smem:[#allocation21_spill]] %s5053_s6 }
  0x20   :  { %5650 = sst [smem:[#allocation22_spill]] %s5058_s12 }
  0x21   :  { %5651 = sst [smem:[#allocation23_spill]] %s5063_s20 }
  0x22   :  { %5652 = sst [smem:[#allocation24_spill]] %s5068_s27 }
  0x23   :  { %5653 = sst [smem:[#allocation25_spill]] %s5073_s4 }
  0x24   :  { %s5078_s14 = sld [smem:[%s5611_s0 + %s4931_s7]]   ;;  %s4935_s7 = smov 22  }
  0x25   :  { %s5083_s19 = sld [smem:[%s5611_s0 + %s4932_s15]]   ;;  %s4936_s15 = smov 23  }
  0x26   :  { %s5088_s3 = sld [smem:[%s5611_s0 + %s4933_s22]]   ;;  %s4937_s22 = smov 24  }
  0x27   :  { %s5093_s8 = sld [smem:[%s5611_s0 + %s4934_s28]]   ;;  %s4938_s28 = smov 25  }
  0x28   :  { %s5098_s21 = sld [smem:[%s5611_s0 + %s4935_s7]]   ;;  %s4939_s7 = smov 26  }
  0x29   :  { %s5103_s25 = sld [smem:[%s5611_s0 + %s4936_s15]]   ;;  %s4940_s15 = smov 27  }
  0x2a   :  { %5654 = sst [smem:[#allocation26_spill]] %s5078_s14 }
  0x2b   :  { %5655 = sst [smem:[#allocation27_spill]] %s5083_s19 }
  0x2c   :  { %5656 = sst [smem:[#allocation28_spill]] %s5088_s3 }
  0x2d   :  { %5657 = sst [smem:[#allocation29_spill]] %s5093_s8 }
  0x2e   :  { %5658 = sst [smem:[#allocation30_spill]] %s5098_s21 }
  0x2f   :  { %5659 = sst [smem:[#allocation31_spill]] %s5103_s25 }
  0x30   :  { %s5108_s29 = sld [smem:[%s5611_s0 + %s4937_s22]]   ;;  %s4941_s22 = smov 28  }
  0x31   :  { %s5113_s14 = sld [smem:[%s5611_s0 + %s4938_s28]]   ;;  %s4942_s28 = smov 29  }
  0x32   :  { %s5118_s21 = sld [smem:[%s5611_s0 + %s4939_s7]]   ;;  %s4943_s7 = smov 30  }
  0x33   :  { %s5123_s12 = sld [smem:[%s5611_s0 + %s4940_s15]]   ;;  %s4944_s15 = smov 31  }
  0x36   :  { %5660 = sst [smem:[#allocation32_spill]] %s5108_s29 }
  0x37   :  { %5661 = sst [smem:[#allocation33_spill]] %s5113_s14 }
  0x38   :  { %5662 = sst [smem:[#allocation34_spill]] %s5118_s21 }
  0x39   :  { %5663 = sst [smem:[#allocation35_spill]] %s5123_s12 }
  0x3a   :  { %s5128_s29 = sld [smem:[%s5611_s0 + %s4941_s22]]   ;;  %s4945_s22 = smov 32  }
  0x3b   :  { %s5133_s14 = sld [smem:[%s5611_s0 + %s4942_s28]]   ;;  %s4946_s28 = smov 33  }
  0x3c   :  { %s5138_s21 = sld [smem:[%s5611_s0 + %s4943_s7]]   ;;  %s4947_s7 = smov 34  }
  0x3d   :  { %s5143_s12 = sld [smem:[%s5611_s0 + %s4944_s15]]   ;;  %s4948_s15 = smov 35  }
  0x40   :  { %5664 = sst [smem:[#allocation36_spill]] %s5128_s29 }
  0x41   :  { %5665 = sst [smem:[#allocation37_spill]] %s5133_s14 }
  0x42   :  { %5666 = sst [smem:[#allocation38_spill]] %s5138_s21 }
  0x43   :  { %5667 = sst [smem:[#allocation39_spill]] %s5143_s12 }
  0x44   :  { %s5148_s29 = sld [smem:[%s5611_s0 + %s4945_s22]]   ;;  %s4949_s22 = smov 36  }
  0x45   :  { %s5153_s14 = sld [smem:[%s5611_s0 + %s4946_s28]]   ;;  %s4950_s28 = smov 37  }
  0x46   :  { %s5158_s21 = sld [smem:[%s5611_s0 + %s4947_s7]]   ;;  %s4951_s7 = smov 38  }
  0x47   :  { %s5163_s12 = sld [smem:[%s5611_s0 + %s4948_s15]]   ;;  %s4952_s15 = smov 39  }
  0x48   :  { %s5168_s8 = sld [smem:[%s5611_s0 + %s4949_s22]]   ;;  %s4953_s22 = smov 40  }
  0x49   :  { %s5173_s3 = sld [smem:[%s5611_s0 + %s4950_s28]]   ;;  %s4954_s28 = smov 41  }
  0x4a   :  { %s5178_s27 = sld [smem:[%s5611_s0 + %s4951_s7]]   ;;  %s4955_s7 = smov 42  }
  0x4b   :  { %5668 = sst [smem:[#allocation40_spill]] %s5153_s14 }
  0x4c   :  { %s5183_s30 = sld [smem:[%s5611_s0 + %s4952_s15]]   ;;  %s4956_s15 = smov 43  }
  0x4d   :  { %5669 = sst [smem:[#allocation41_spill]] %s5163_s12 }
  0x4e   :  { %s5188_s4 = sld [smem:[%s5611_s0 + %s4953_s22]]   ;;  %s4957_s22 = smov 44  }
  0x4f   :  { %5670 = sst [smem:[#allocation42_spill]] %s5173_s3 }
  0x50   :  { %s5193_s6 = sld [smem:[%s5611_s0 + %s4954_s28]]   ;;  %s4958_s28 = smov 45  }
  0x51   :  { %s5198_s17 = sld [smem:[%s5611_s0 + %s4955_s7]]   ;;  %s4959_s7 = smov 46  }
  0x52   :  { %s5203_s25 = sld [smem:[%s5611_s0 + %s4956_s15]]   ;;  %s4960_s15 = smov 47  }
  0x53   :  { %s5208_s13 = sld [smem:[%s5611_s0 + %s4957_s22]]   ;;  %s4961_s22 = smov 48  }
  0x54   :  { %5671 = sst [smem:[#allocation43_spill]] %s5188_s4 }
  0x55   :  { %s5213_s19 = sld [smem:[%s5611_s0 + %s4958_s28]]   ;;  %s4962_s28 = smov 49  }
  0x56   :  { %s5218_s9 = sld [smem:[%s5611_s0 + %s4959_s7]]   ;;  %s4963_s7 = smov 50  }
  0x57   :  { %s5223_s20 = sld [smem:[%s5611_s0 + %s4960_s15]]   ;;  %s4964_s15 = smov 51  }
  0x58   :  { %s5228_s5 = sld [smem:[%s5611_s0 + %s4961_s22]]   ;;  %s4965_s22 = smov 52  }
  0x5b   :  { %5672 = sst [smem:[#allocation44_spill]] %s5213_s19 }
  0x5c   :  { %5673 = sst [smem:[#allocation45_spill]] %s5218_s9 }
  0x5d   :  { %5674 = sst [smem:[#allocation46_spill]] %s5223_s20 }
  0x5e   :  { %5675 = sst [smem:[#allocation47_spill]] %s5228_s5 }
  0x5f   :  { %s5233_s19 = sld [smem:[%s5611_s0 + %s4962_s28]]   ;;  %s4966_s28 = smov 53  }
  0x60   :  { %s5238_s9 = sld [smem:[%s5611_s0 + %s4963_s7]]   ;;  %s4967_s7 = smov 54  }
  0x61   :  { %s5243_s20 = sld [smem:[%s5611_s0 + %s4964_s15]]   ;;  %s4968_s15 = smov 55  }
  0x62   :  { %s5248_s5 = sld [smem:[%s5611_s0 + %s4965_s22]]   ;;  %s4969_s22 = smov 56  }
  0x65   :  { %5676 = sst [smem:[#allocation48_spill]] %s5233_s19 }
  0x66   :  { %5677 = sst [smem:[#allocation49_spill]] %s5238_s9 }
  0x67   :  { %5678 = sst [smem:[#allocation50_spill]] %s5243_s20 }
  0x68   :  { %5679 = sst [smem:[#allocation51_spill]] %s5248_s5 }
  0x69   :  { %s5253_s19 = sld [smem:[%s5611_s0 + %s4966_s28]]  }
  0x6a   :  { %s5258_s9 = sld [smem:[%s5611_s0 + %s4967_s7]]  }
  0x6b   :  { %s5263_s20 = sld [smem:[%s5611_s0 + %s4968_s15]]  }
  0x6c   :  { %s5268_s5 = sld [smem:[%s5611_s0 + %s4969_s22]]  }
  0x71   :  { %5680 = sst [smem:[#allocation52_spill]] %s5263_s20 }
  0x72   :  { %5681 = sst [smem:[#allocation53_spill]] %s5268_s5 }
  0x73   :  { %119 = vsyncpa [#allocation7], 0  ;;  %s5270_s28 = smov 0  }
  0x74 LB: > { %5682 = sst [smem:[#allocation54_spill]] %s4912_s28  ;;  %s5276_s1 = sadd.s32 4294967295, %s4912_s28   ;;  %s4912_s28 = sphi %s5270_s28, %s125_s28  }
  0x75   : > { %p4261_p0 = scmp.ge.s32.totalorder %s4912_s28, 1  ;;  %p1625_p1 = scmp.lt.s32.totalorder %s4912_s28, 3 }
  0x77   : > { %p1626_p2 = pnand %p4261_p0, %p1625_p1 }
  0x78   : > { %s5683_s14 = sld [smem:[#allocation40_spill]] (!%p1626_p2)  ;;  %s5684_s12 = sld [smem:[#allocation41_spill]] (!%p1626_p2) }
  0x79   : > { %1629 = sbr.rel (%p1626_p2) target bundleno = 3330 (0xd02), region = 240  ;;  %s5685_s3 = sld [smem:[#allocation42_spill]] (!%p1626_p2) }
  0x7a   : > { %s5686_s4 = sld [smem:[#allocation43_spill]] (!%p1626_p2)  ;;  %p1802_p3 = scmp.lt.s32.totalorder (!%p1626_p2), %s5276_s1, 1 }
  0x7b   : > { %p4280_p4 = scmp.ne.s32.totalorder (!%p1626_p2), %s5276_s1, 0 }
  0x80   : > { %s5282_s0 = scalar_select %p1802_p3, %s5276_s1, 1 }
  0x81   : > { %1863 = sbr.rel (%p4280_p4) target bundleno = 1261 (0x4ed), region = 244  ;;  %v1867_v0 = vld [vmem:[%s5043_s24] sm:$0xf] (!%p4280_p4)  ;;  %vm1879_vm0 = vcmask (!%p4280_p4), 1043456   ;;  %v4970_v2 = vmov (!%p4280_p4), 0.0   ;;  %vm4971_vm1 = vmmov (!%p4280_p4), 0  }
  0x82   : > { %s4391_s2 = sshll.u32 %s5282_s0, 4  ;;  %4493 = vmatprep.subr.bf16.mxu0 (!%p4280_p4), %v4970_v2  ;;  %v1881_v3 = vsel (!%p4280_p4), %vm1879_vm0, %v1867_v0, 0  ;;  %4495 = vmatprep.mubr.msk.bf16.mxu0 (!%p4280_p4), %vm4971_vm1, %v4970_v2  ;;  %vm1875_vm2 = vcmask (!%p4280_p4), 64512   ;;  %vm2018_vm3 = vcmask (!%p4280_p4), 1042432   ;;  %vm2173_vm4 = vcmask (!%p4280_p4), 1041408   ;;  %s5692_s7 = sld [smem:[#allocation31_spill]] (!%p4280_p4) }
  0x83   : > { %s5288_s10 = scalar_lea.vmem %s5148_s29, %s4391_s2  ;;  %s5291_s11 = scalar_lea.vmem %s5683_s14, %s4391_s2  ;;  %4494 = vmatpush3.bf16.msra.mxu0 (!%p4280_p4), %v1881_v3  ;;  %vm2301_vm5 = vcmask (!%p4280_p4), 1040384   ;;  %4499 = vmatprep.subr.bf16.mxu1 (!%p4280_p4), %v4970_v2  ;;  %v4972_v8 = vmov (!%p4280_p4), 65535   ;;  %vm2011_vm6 = vcmask (!%p4280_p4), 48128   ;;  %vm2169_vm7 = vcmask (!%p4280_p4), 39936  }
  0x84   : > { %s5294_s15 = scalar_lea.vmem %s5158_s21, %s4391_s2  ;;  %s5297_s16 = scalar_lea.vmem %s5684_s12, %s4391_s2  ;;  %v2174_v9 = vsel (!%p4280_p4), %vm2173_vm4, 4294967295, %v4972_v8  ;;  %v2302_v10 = vsel (!%p4280_p4), %vm2301_vm5, 4294967295, %v4972_v8  ;;  %4503 = vmatprep.mubr.msk.bf16.mxu1 (!%p4280_p4), %vm4971_vm1, %v4970_v2  ;;  %vm2297_vm8 = vcmask (!%p4280_p4), 23552   ;;  %vm1950_vm9 = vcmask (!%p4280_p4), 261120  }
  0x85   : > { %s5300_s18 = scalar_lea.vmem %s5685_s3, %s4391_s2  ;;  %s5305_s23 = scalar_lea.vmem %s5183_s30, %s4391_s2  ;;  %v2175_v15 = vsel (!%p4280_p4), %vm2018_vm3, %v2174_v9, 0  ;;  %v2303_v18 = vsel (!%p4280_p4), %vm2173_vm4, %v2302_v10, 0  ;;  %vm2611_vm10 = vcmask (!%p4280_p4), 254976   ;;  %vm2621_vm11 = vcmask (!%p4280_p4), 15360  }
  0x86   : > { %s5308_s26 = scalar_lea.vmem %s5686_s4, %s4391_s2  ;;  %s5311_s28 = scalar_lea.vmem %s5193_s6, %s4391_s2 }
  0x87   : > { %s5316_s20 = scalar_lea.vmem %s5203_s25, %s4391_s2  ;;  %s5687_s14 = sld [smem:[#allocation9_spill]] (!%p4280_p4) }
  0x88   : > { %s5688_s12 = sld [smem:[#allocation23_spill]]  ;;  %s5689_s3 = sld [smem:[#allocation10_spill]]  ;;  %v2289_v22 = vld [vmem:[%s5692_s7] sm:$0x3] }
  0x89   : > { %s5690_s2 = sld [smem:[#allocation27_spill]]  ;;  %s5693_s5 = sld [smem:[#allocation12_spill]]  ;;  %v2305_v24 = vand.u32 %v2303_v18, %v2289_v22 }
  0x8a   : > { %s5694_s22 = sld [smem:[#allocation21_spill]]  ;;  %s5697_s7 = sld [smem:[#allocation24_spill]] }
  0x8b   : > { %s5706_s4 = sld [smem:[#allocation30_spill]] }
  0x8d   : > { %v1864_v1 = vld [vmem:[%s5687_s14] sm:$0xff]  ;;  %v1865_v4 = vld [vmem:[%s5687_s14 + $0x8] sm:$0xff] }
  0x8e   : > { %v2003_v5 = vld [vmem:[%s5688_s12] sm:$0x7]  ;;  %v1866_v6 = vpack.c.bf16 %v1865_v4, %v1864_v1  ;;  %s5691_s12 = sld [smem:[#allocation11_spill]]  ;;  %v1998_v12 = vld [vmem:[%s5689_s3 + $0x8] sm:$0xff]  ;;  %v1999_v16 = vld [vmem:[%s5689_s3 + $0x10] sm:$0xff] }
  0x8f   : > { %v1997_v7 = vld [vmem:[%s5689_s3] sm:$0xff]  ;;  %4743 = vmatprep.subr.msk.bf16.mxu0 %vm2018_vm3, %v2003_v5  ;;  %v2020_v11 = vsel %vm2018_vm3, %v2003_v5, 0  ;;  %v2000_v17 = vld [vmem:[%s5689_s3 + $0x18] sm:$0xff]  ;;  %s5696_s3 = sld [smem:[#allocation20_spill]] }
  0x90   : > { %v2001_v13 = vpack.c.bf16 %v1998_v12, %v1997_v7  ;;  %4496 = vmatmul.mubr.msk.bf16.vlgmr.msra.gmra.mrb[0].mxu0 %vm1875_vm2, %v1866_v6  ;;  %v2161_v14 = vld [vmem:[%s5690_s2] sm:$0x7]  ;;  %v2002_v19 = vpack.c.bf16 %v2000_v17, %v1999_v16  ;;  %s5695_s2 = sld [smem:[#allocation25_spill]]  ;;  %v4825_v28 = vld [vmem:[%s5694_s22 + $0x8] sm:$0xff]  }
  0x91   : > { %4508 = vmatpush3.bf16.msra.mxu0 %v2020_v11  ;;  %v2177_v20 = vand.u32 %v2175_v15, %v2161_v14  ;;  %v2287_v25 = vld [vmem:[%s5693_s5] sm:$0x3]  ;;  %s5698_s5 = sld [smem:[#allocation28_spill]] }
  0x92   : > { %4509 = vmatprep.mubr.msk.bf16.mxu0 %vm2011_vm6, %v2001_v13  ;;  %4521 = vmatprep.subr.bf16.mxu0 %v4970_v2  ;;  %v2288_v26 = vpack.c.bf16 %v2287_v25, %v2287_v25  ;;  %v4824_v27 = vld [vmem:[%s5694_s22] sm:$0xff]  }
  0x93   : > { %4500 = vmatpush3.bf16.msra.mxu1 %v4824_v27  ;;  %v4287_v39 = vld [vmem:[%s5697_s7] ss:$0 sm:$0xff]  ;;  %s5701_s7 = sld [smem:[#allocation33_spill]] }
  0x94   : > { %v2159_v21 = vld [vmem:[%s5691_s12] sm:$0x3]  ;;  %4501 = vmatprep.subr.bf16.mxu1 %v4970_v2  ;;  %s5700_s12 = sld [smem:[#allocation32_spill]] }
  0x95   : > { %v2160_v23 = vpack.c.bf16 %v2159_v21, %v2159_v21  ;;  %v4281_v30 = vld [vmem:[%s5696_s3] ss:$0 sm:$0xff]  ;;  %s5699_s3 = sld [smem:[#allocation29_spill]] }
  0x96   : > { %v4826_v29 = vld [vmem:[%s5695_s2] sm:$0xff]   ;;  %v4827_v41 = vld [vmem:[%s5695_s2 + $0x8] sm:$0xff]   ;;  %s5703_s2 = sld [smem:[#allocation36_spill]] }
  0x97   : > { %4502 = vmatpush3.bf16.msra.mxu1 %v4825_v28  ;;  %v4295_v54 = vld [vmem:[%s5698_s5] ss:$0 sm:$0xff]  ;;  %s5702_s5 = sld [smem:[#allocation35_spill]] }
  0x98   : > { %4510 = vmatmul.mubr.msk.bf16.vlgmr.msra.gmra.mrb[4].mxu0 %vm2011_vm6, %v2002_v19  ;;  %4513 = vmatprep.subr.bf16.mxu1 %v4826_v29 }
  0x99   : > { %4522 = vmatpush3.bf16.msra.mxu0 %v2177_v20  ;;  %4523 = vmatprep.mubr.msk.bf16.mxu0 %vm4971_vm1, %v4970_v2  ;;  %v4830_v5 = vld [vmem:[%s5701_s7] sm:$0xff]   ;;  %v4831_v11 = vld [vmem:[%s5701_s7 + $0x8] sm:$0xff]  }
  0x9a   : > { %4535 = vmatprep.subr.bf16.mxu0 %v4970_v2  ;;  %v4301_v1 = vld [vmem:[%s5700_s12] ss:$0 sm:$0xff]  ;;  %s5704_s12 = sld [smem:[#allocation22_spill]] }
  0x9b   : > { %v4828_v58 = vld [vmem:[%s5699_s3] sm:$0xff]   ;;  %v4829_v0 = vld [vmem:[%s5699_s3 + $0x8] sm:$0xff]   ;;  %s5705_s3 = sld [smem:[#allocation26_spill]] }
  0x9c   : > { %v4834_v15 = vld [vmem:[%s5703_s2] sm:$0xff]   ;;  %v4835_v16 = vld [vmem:[%s5703_s2 + $0x8] sm:$0xff]   ;;  %s5707_s2 = sld [smem:[#allocation34_spill]] }
  0x9d   : > { %v4832_v13 = vld [vmem:[%s5702_s5] sm:$0xff]   ;;  %v4833_v14 = vld [vmem:[%s5702_s5 + $0x8] sm:$0xff]  }
  0xa0   : > { %4524 = vmatmul.mubr.msk.bf16.vlgmr.msra.gmra.mrb[8].mxu0 %vm2169_vm7, %v2160_v23  ;;  %v4283_v17 = vld [vmem:[%s5704_s12] ss:$0 sm:$0xff]  ;;  %s5709_s12 = sld [smem:[#allocation37_spill]] }
  0xa1   : > { %4536 = vmatpush3.bf16.msra.mxu0 %v2305_v24  ;;  %4537 = vmatprep.mubr.msk.bf16.mxu0 %vm4971_vm1, %v4970_v2  ;;  %v4290_v24 = vld [vmem:[%s5705_s3] ss:$0 sm:$0xff]  ;;  %s5708_s3 = sld [smem:[#allocation38_spill]] }
  0xa2   : > { %4549 = vmatprep.subr.bf16.mxu0 %v4970_v2 }
  0xa8   : > { %4538 = vmatmul.mubr.msk.bf16.vlgmr.msra.gmra.mrb[12].mxu0 %vm2297_vm8, %v2288_v26 }
  0xa9   : > { %4553 = vmatprep.mubr.msk.bf16.mxu0 %vm4971_vm1, %v4970_v2  ;;  %4550 = vmatpush3.bf16.msra.mxu0 %v4834_v15 }
  0xaa   : > { %4551 = vmatprep.subr.bf16.mxu0 %v4970_v2 }
  0xad   : > { %4552 = vmatpush3.bf16.msra.mxu0 %v4835_v16 }
  0xae   : > { %4565 = vmatprep.subr.bf16.mxu0 %v4970_v2 }
 0x163   : > { %v1917_v31 = vpop.f32.mrb[0].mxu0 }
 0x164   : > { %v1918_v32 = vadd.f32 %v4281_v30, %v1917_v31  ;;  %v4497_v33 = vpop.f32.mrb[1].mxu0 }
 0x165   : > { %v1920_v34 = vpop.f32.mrb[2].mxu0  ;;  %v4297_v33 = vld [vmem:[%s5706_s4] ss:$0 sm:$0xff]  ;;  %s5710_s4 = sld [smem:[#allocation39_spill]] }
 0x166   : > { %v1921_v35 = vadd.f32 %v4281_v30, %v1920_v34  ;;  %v4498_v36 = vpop.f32.mrb[3].mxu0  ;;  %v1924_v37 = vmax.f32 %v1918_v32, 0.0 }
 0x168   : > { %v1925_v38 = vmax.f32 %v1921_v35, 0.0 }
 0x16a   : > { %v1926_v40 = vpack.c.bf16 %v1925_v38, %v1924_v37 }
 0x16b   : > { %v4511_v42 = vpop.f32.mrb[4].mxu0 }
 0x16c   : > { %v2065_v43 = vadd.f32 %v4511_v42, %v4287_v39  ;;  %4504 = vmatmul.mubr.msk.bf16.vlgmr.msra.gmra.mrb[0].mxu1 %vm1950_vm9, %v1926_v40  ;;  %v2056_v44 = vpop.f32.mrb[5].mxu0  ;;  %v4303_v40 = vld [vmem:[%s5707_s2] ss:$0 sm:$0xff]  ;;  %s5711_s2 = sld [smem:[#allocation15_spill]] }
 0x16d   : > { %v2057_v45 = vadd.f32 %v4287_v39, %v2056_v44  ;;  %v4512_v46 = vpop.f32.mrb[6].mxu0  ;;  %4514 = vmatpush3.bf16.msra.mxu1 %v4826_v29 }
 0x16e   : > { %v2068_v47 = vadd.f32 %v4512_v46, %v4287_v39  ;;  %v2059_v48 = vpop.f32.mrb[7].mxu0  ;;  %4515 = vmatprep.subr.bf16.mxu1 %v4827_v41  ;;  %v2073_v50 = vmax.f32 %v2065_v43, 0.0 }
 0x16f   : > { %v2060_v49 = vadd.f32 %v4287_v39, %v2059_v48  ;;  %v2071_v52 = vmax.f32 %v2057_v45, 0.0  ;;  %v4837_v48 = vld [vmem:[%s5708_s3 + $0x8] sm:$0xff]  }
 0x170   : > { %v2074_v51 = vmax.f32 %v2068_v47, 0.0  ;;  %v4836_v47 = vld [vmem:[%s5708_s3] sm:$0xff]  }
 0x171   : > { %v2072_v53 = vmax.f32 %v2060_v49, 0.0  ;;  %4516 = vmatpush3.bf16.msra.mxu1 %v4827_v41 }
 0x172   : > { %v2076_v55 = vpack.c.bf16 %v2074_v51, %v2073_v50  ;;  %4527 = vmatprep.subr.bf16.mxu1 %v4970_v2 }
 0x173   : > { %v2075_v56 = vpack.c.bf16 %v2072_v53, %v2071_v52  ;;  %v2213_v57 = vpop.f32.mrb[8].mxu0 }
 0x174   : > { %v2214_v59 = vadd.f32 %v4295_v54, %v2213_v57  ;;  %v4525_v60 = vpop.f32.mrb[9].mxu0  ;;  %v4313_v54 = vld [vmem:[%s5709_s12] ss:$0 sm:$0xff] }
 0x175   : > { %4517 = vmatprep.mubr.msk.bf16.mxu1 %vm1950_vm9, %v2075_v56  ;;  %v2216_v61 = vpop.f32.mrb[10].mxu0 }
 0x176   : > { %v2219_v62 = vmax.f32 %v2214_v59, 0.0  ;;  %4518 = vmatmul.mubr.msk.bf16.vlgmr.msra.gmra.mrb[4].mxu1 %vm1950_vm9, %v2076_v55  ;;  %v4526_v63 = vpop.f32.mrb[11].mxu0 }
 0x177   : > { %4528 = vmatpush3.bf16.msra.mxu1 %v4828_v58  ;;  %4531 = vmatprep.mubr.msk.bf16.mxu1 %vm4971_vm1, %v4970_v2 }
 0x178   : > { %4529 = vmatprep.subr.bf16.mxu1 %v4970_v2  ;;  %v2220_v3 = vpack.c.bf16 %v2219_v62, %v2219_v62 }
 0x17b   : > { %4530 = vmatpush3.bf16.msra.mxu1 %v4829_v0  ;;  %v2341_v4 = vpop.f32.mrb[12].mxu0 }
 0x17c   : > { %v2342_v6 = vadd.f32 %v4301_v1, %v2341_v4  ;;  %v4539_v7 = vpop.f32.mrb[13].mxu0  ;;  %4541 = vmatprep.subr.bf16.mxu1 %v4970_v2 }
 0x17d   : > { %v2344_v8 = vpop.f32.mrb[14].mxu0 }
 0x17e   : > { %v2347_v9 = vmax.f32 %v2342_v6, 0.0  ;;  %4532 = vmatmul.mubr.msk.bf16.vlgmr.msra.gmra.mrb[8].mxu1 %vm1950_vm9, %v2220_v3  ;;  %v4540_v10 = vpop.f32.mrb[15].mxu0  ;;  %v4838_v6 = vld [vmem:[%s5711_s2] sm:$0xff]  }
 0x17f   : > { %4542 = vmatpush3.bf16.msra.mxu1 %v4830_v5  ;;  %4545 = vmatprep.mubr.msk.bf16.mxu1 %vm4971_vm1, %v4970_v2 }
 0x180   : > { %4543 = vmatprep.subr.bf16.mxu1 %v4970_v2  ;;  %v2348_v12 = vpack.c.bf16 %v2347_v9, %v2347_v9 }
 0x183   : > { %4544 = vmatpush3.bf16.msra.mxu1 %v4831_v11 }
 0x184   : > { %4557 = vmatprep.subr.bf16.mxu1 %v4970_v2 }
 0x186   : > { %4546 = vmatmul.mubr.msk.bf16.vlgmr.msra.gmra.mrb[12].mxu1 %vm1950_vm9, %v2348_v12 }
 0x187   : > { %4561 = vmatprep.mubr.msk.bf16.mxu1 %vm4971_vm1, %v4970_v2  ;;  %4558 = vmatpush3.bf16.msra.mxu1 %v4832_v13 }
 0x188   : > { %4559 = vmatprep.subr.bf16.mxu1 %v4970_v2 }
 0x18b   : > { %4560 = vmatpush3.bf16.msra.mxu1 %v4833_v14 }
 0x18c   : > { %4573 = vmatprep.subr.bf16.mxu1 %v4970_v2 }
 0x23f   : > { %v1988_v18 = vpop.f32.mrb[0].mxu1 }
 0x240   : > { %v1989_v19 = vadd.f32 %v4283_v17, %v1988_v18  ;;  %v4505_v20 = vpop.f32.mrb[1].mxu1 }
 0x241   : > { %v1991_v21 = vpop.f32.mrb[2].mxu1 }
 0x242   : > { %1995 = vst.msk [vmem:[#allocation2] sm:$0xff] %vm1950_vm9, %v1989_v19  ;;  %v1992_v22 = vadd.f32 %v4283_v17, %v1991_v21  ;;  %v4506_v23 = vpop.f32.mrb[3].mxu1 }
 0x244   : > { %1996 = vst.msk [vmem:[#allocation2 + $0x8] sm:$0xff] %vm1950_vm9, %v1992_v22 }
 0x249   : > { %v4519_v25 = vpop.f32.mrb[4].mxu1 }
 0x24a   : > { %v2149_v26 = vadd.f32 %v4519_v25, %v4290_v24  ;;  %v2140_v27 = vpop.f32.mrb[5].mxu1 }
 0x24b   : > { %v2141_v28 = vadd.f32 %v4290_v24, %v2140_v27  ;;  %v4520_v29 = vpop.f32.mrb[6].mxu1 }
 0x24c   : > { %2157 = vst.msk [vmem:[#allocation3 + $0x10] sm:$0xff] %vm1950_vm9, %v2149_v26  ;;  %v2152_v30 = vadd.f32 %v4520_v29, %v4290_v24  ;;  %v2143_v31 = vpop.f32.mrb[7].mxu1 }
 0x24d   : > { %2155 = vst.msk [vmem:[#allocation3] sm:$0xff] %vm1950_vm9, %v2141_v28  ;;  %v2144_v32 = vadd.f32 %v4290_v24, %v2143_v31 }
 0x24e   : > { %2158 = vst.msk [vmem:[#allocation3 + $0x18] sm:$0xff] %vm1950_vm9, %v2152_v30 }
 0x24f   : > { %2156 = vst.msk [vmem:[#allocation3 + $0x8] sm:$0xff] %vm1950_vm9, %v2144_v32 }
 0x251   : > { %v2281_v34 = vpop.f32.mrb[8].mxu1 }
 0x252   : > { %v2282_v35 = vadd.f32 %v4297_v33, %v2281_v34  ;;  %v4533_v36 = vpop.f32.mrb[9].mxu1 }
 0x253   : > { %v2284_v37 = vpop.f32.mrb[10].mxu1 }
 0x254   : > { %v2415_v38 = vpack.c.bf16 %v2282_v35, %v2282_v35  ;;  %v4534_v39 = vpop.f32.mrb[11].mxu1 }
 0x256   : > { %4562 = vmatmul.mubr.msk.bf16.vlgmr.msra.gmra.mrb[16].mxu1 %vm1950_vm9, %v2415_v38 }
 0x257   : > { %4575 = vmatprep.mubr.msk.bf16.mxu1 %vm4971_vm1, %v4970_v2 }
 0x259   : > { %v2409_v41 = vpop.f32.mrb[12].mxu1 }
 0x25a   : > { %v2410_v42 = vadd.f32 %v4303_v40, %v2409_v41  ;;  %v4547_v43 = vpop.f32.mrb[13].mxu1 }
 0x25b   : > { %v2412_v44 = vpop.f32.mrb[14].mxu1 }
 0x25c   : > { %v2420_v45 = vpack.c.bf16 %v2410_v42, %v2410_v42  ;;  %v4548_v46 = vpop.f32.mrb[15].mxu1 }
 0x25e   : > { %4554 = vmatmul.mubr.msk.bf16.vlgmr.msra.gmra.mrb[16].mxu0 %vm1950_vm9, %v2420_v45 }
 0x25f   : > { %4569 = vmatprep.mubr.msk.bf16.mxu0 %vm4971_vm1, %v4970_v2  ;;  %4566 = vmatpush3.bf16.msra.mxu0 %v4836_v47 }
 0x260   : > { %4567 = vmatprep.subr.bf16.mxu0 %v4970_v2  ;;  %v4314_v2 = vld [vmem:[%s5710_s4] ss:$0 sm:$0xff] }
 0x263   : > { %4568 = vmatpush3.bf16.msra.mxu0 %v4837_v48 }
 0x329   : > { %v2529_v49 = vpop.f32.mrb[16].mxu1 }
 0x32a   : > { %v4563_v50 = vpop.f32.mrb[17].mxu1 }
 0x32b   : > { %v2532_v51 = vpop.f32.mrb[18].mxu1 }
 0x32c   : > { %v4564_v52 = vpop.f32.mrb[19].mxu1 }
 0x331   : > { %v2474_v53 = vpop.f32.mrb[16].mxu0 }
 0x332   : > { %v2530_v55 = vadd.f32 %v2529_v49, %v2474_v53  ;;  %v4555_v56 = vpop.f32.mrb[17].mxu0 }
 0x333   : > { %v2477_v57 = vpop.f32.mrb[18].mxu0 }
 0x334   : > { %v2542_v58 = vadd.f32 %v4313_v54, %v2530_v55  ;;  %v4556_v59 = vpop.f32.mrb[19].mxu0 }
 0x336   : > { %v2543_v60 = vmax.f32 %v2542_v58, 0.0 }
 0x338   : > { %v2544_v61 = vpack.c.bf16 %v2543_v60, %v2543_v60 }
 0x33a   : > { %4570 = vmatmul.mubr.msk.bf16.vlgmr.msra.gmra.mrb[20].mxu0 %vm1950_vm9, %v2544_v61 }
 0x40d   : > { %v2605_v62 = vpop.f32.mrb[20].mxu0 }
 0x40e   : > { %v2606_v63 = vadd.f32 %v4314_v2, %v2605_v62  ;;  %v4571_v0 = vpop.f32.mrb[21].mxu0 }
 0x40f   : > { %v2608_v1 = vpop.f32.mrb[22].mxu0 }
 0x410   : > { %2612 = vst.msk [vmem:[#allocation4] sm:$0x3] %vm2611_vm10, %v2606_v63  ;;  %v2615_v3 = vpack.c.bf16 %v2606_v63, %v2606_v63  ;;  %v4572_v4 = vpop.f32.mrb[23].mxu0 }
 0x412   : > { %v2626_v5 = vsel %vm2301_vm5, %v2615_v3, 0 }
 0x413   : > { %4574 = vmatpush3.bf16.msra.mxu1 %v2626_v5 }
 0x416   : > { %4576 = vmatmul.mubr.msk.bf16.vlgmr.msra.gmra.mrb[20].mxu1 %vm2621_vm11, %v4838_v6 }
 0x4e9   : > { %v2662_v7 = vpop.f32.mrb[20].mxu1 }
 0x4ea   : > { %2669 = vst.msk [vmem:[#allocation5] sm:$0xff] %vm1950_vm9, %v2662_v7  ;;  %v4577_v8 = vpop.f32.mrb[21].mxu1 }
 0x4eb   : > { %v2665_v9 = vpop.f32.mrb[22].mxu1 }
 0x4ec   : > { %2670 = vst.msk [vmem:[#allocation5 + $0x8] sm:$0xff] %vm1950_vm9, %v2665_v9  ;;  %v4578_v10 = vpop.f32.mrb[23].mxu1 }
 0x4ed PF: > { %v4841_v11 = vld [vmem:[%s5297_s16] sm:$0xff]   ;;  %v4973_v12 = vmov 0.0   ;;  %v4843_v14 = vld [vmem:[%s5297_s16 + $0x8] sm:$0xff]   ;;  %vm4974_vm12 = vmmov 0   ;;  %s5712_s16 = sld [smem:[#allocation14_spill]]  ;;  %vm2711_vm13 = vcmask 261120  }
 0x4ee   : > { %4579 = vmatprep.subr.bf16.mxu0 %v4973_v12  ;;  %4595 = vmatprep.subr.bf16.mxu1 %v4973_v12  ;;  %v4842_v13 = vld [vmem:[%s5291_s11] sm:$0xff]   ;;  %v4844_v15 = vld [vmem:[%s5291_s11 + $0x8] sm:$0xff]   ;;  %s5713_s12 = sld [smem:[#allocation13_spill]]  ;;  %vm2881_vm14 = vcmask 130048   ;;  %v2674_v39 = vld [vmem:[#allocation3] sm:$0xff]  ;;  %s5715_s11 = sld [smem:[#allocation17_spill]] }
 0x4ef   : > { %4580 = vmatpush3.bf16.msra.mxu0 %v4841_v11  ;;  %4583 = vmatprep.mubr.msk.bf16.mxu0 %vm4974_vm12, %v4973_v12  ;;  %v5430_v18 = vld [vmem:[#allocation2] sm:$0xff]  ;;  %v5434_v20 = vld [vmem:[#allocation2 + $0x8] sm:$0xff]  ;;  %v2675_v40 = vld [vmem:[#allocation3 + $0x8] sm:$0xff]  ;;  %v4975_v63 = vmov 0   ;;  %p4362_p5 = scmp.ne.s32.totalorder %s5276_s1, 1 }
 0x4f0   : > { %4596 = vmatpush3.bf16.msra.mxu1 %v4842_v13  ;;  %4581 = vmatprep.subr.bf16.mxu0 %v4973_v12  ;;  %v5438_v21 = vpack.c.bf16 %v5434_v20, %v5430_v18  ;;  %v4845_v22 = vld [vmem:[%s5288_s10] sm:$0xff]   ;;  %v4846_v23 = vld [vmem:[%s5288_s10 + $0x8] sm:$0xff]   ;;  %v2678_v41 = vpack.c.bf16 %v2675_v40, %v2674_v39  ;;  %s5714_s10 = scalar_lea.vmem %s5168_s8, %s5282_s0  ;;  %s5723_s4 = sld [smem:[#allocation48_spill]] (!%p4362_p5)  ;;  %vm4977_vm15 = vmmov (!%p4362_p5), 0   ;;  %vm3876_vm0 = vcmask (!%p4362_p5), 9216  }
 0x4f1   : > { %4597 = vmatprep.subr.bf16.mxu1 %v4973_v12  ;;  %4599 = vmatprep.mubr.msk.bf16.mxu1 %vm4974_vm12, %v4973_v12  ;;  %v2680_v16 = vld [vmem:[#allocation5] sm:$0xff]  ;;  %v4851_v38 = vld [vmem:[%s5294_s15] sm:$0xff]   ;;  %v4852_v42 = vld [vmem:[%s5294_s15 + $0x8] sm:$0xff]   ;;  %s5716_s15 = scalar_lea.vmem %s5178_s27, %s5282_s0  ;;  %s5724_s2 = sld [smem:[#allocation50_spill]] (!%p4362_p5)  ;;  %vm4015_vm1 = vcmask (!%p4362_p5), 31744  }
 0x4f2   : > { %v2676_v43 = vld [vmem:[#allocation3 + $0x10] sm:$0xff]  ;;  %v2677_v44 = vld [vmem:[#allocation3 + $0x18] sm:$0xff]  ;;  %4839 = vset.pattern.permute.xlu1 %v4975_v63 }
 0x4f3   : > { %v2681_v17 = vld [vmem:[#allocation5 + $0x8] sm:$0xff]  ;;  %4582 = vmatpush3.bf16.msra.mxu0 %v4843_v14  ;;  %v4848_v32 = vld [vmem:[%s5712_s16 + $0x8] sm:$0xff]   ;;  %v2679_v45 = vpack.c.bf16 %v2677_v44, %v2676_v43 }
 0x4f4   : > { %v5432_v19 = vpack.c.bf16 %v2681_v17, %v2680_v16  ;;  %4598 = vmatpush3.bf16.msra.mxu1 %v4844_v15  ;;  %4587 = vmatprep.subr.bf16.mxu0 %v4973_v12  ;;  %v4847_v24 = vld [vmem:[%s5712_s16] sm:$0xff]   ;;  %v4850_v26 = vld [vmem:[%s5713_s12 + $0x8] sm:$0xff]  }
 0x4f5   : > { %v4849_v25 = vld [vmem:[%s5713_s12] sm:$0xff]   ;;  %v4854_v47 = vld [vmem:[%s5300_s18 + $0x8] sm:$0xff]  }
 0x4f6   : > { %4584 = vmatmul.mubr.msk.bf16.vlgmr.msra.gmra.mrb[0].mxu0 %vm2711_vm13, %v5432_v19  ;;  %3180 = vxpose.xlu0.c.b16.start [1/2] (short) (narrow) %v4849_v25, 16  ;;  %v4853_v46 = vld [vmem:[%s5300_s18] sm:$0xff]   ;;  %v3241_v0 = vld [vmem:[%s5715_s11 + $0x8] sm:$0xff]  ;;  %s5720_s18 = sld [smem:[#allocation19_spill]] (!%p4362_p5) }
 0x4f7   : > { %4600 = vmatmul.mubr.msk.bf16.vlgmr.msra.gmra.mrb[0].mxu1 %vm2711_vm13, %v5438_v21  ;;  %4588 = vmatpush3.bf16.msra.mxu0 %v4845_v22  ;;  %v4341_v48 = vld [vmem:[%s5714_s10] ss:$0 sm:$0xff]  ;;  %v4857_v17 = vld [vmem:[%s5308_s26 + $0x8] sm:$0xff]   ;;  %s5725_s10 = sld [smem:[#allocation44_spill]] (!%p4362_p5) }
 0x4f8   : > { %4589 = vmatprep.subr.bf16.mxu0 %v4973_v12  ;;  %4591 = vmatprep.mubr.msk.bf16.mxu0 %vm4974_vm12, %v4973_v12  ;;  %v3240_v62 = vld [vmem:[%s5715_s11] sm:$0xff]  ;;  %v4858_v22 = vld [vmem:[%s5305_s23 + $0x8] sm:$0xff]  }
 0x4f9   : > { %4605 = vmatprep.mubr.msk.bf16.mxu1 %vm2881_vm14, %v4847_v24  ;;  %3244 = vperm.xlu1 %4839, %v3240_v62   ;;  %v4342_v1 = vld [vmem:[%s5716_s15] ss:$0 sm:$0xff]  ;;  %s5726_s15 = sld [smem:[#allocation51_spill]] (!%p4362_p5) }
 0x4fa   : > { %3181 = vxpose.xlu0.c.b16.end [2/2] (short) (narrow) %v4850_v26, 16  ;;  %v4855_v15 = vld [vmem:[%s5308_s26] sm:$0xff]   ;;  %s5722_s26 = sld [smem:[#allocation49_spill]] (!%p4362_p5) }
 0x4fb   : > { %4590 = vmatpush3.bf16.msra.mxu0 %v4846_v23  ;;  %v4856_v16 = vld [vmem:[%s5305_s23] sm:$0xff]   ;;  %s5721_s23 = sld [smem:[#allocation18_spill]] (!%p4362_p5) }
 0x4fc   : > { %4623 = vmatprep.subr.bf16.mxu0 %v4853_v46 }
 0x4fd   : > { %3249 = vperm.xlu1 %4839, %v3241_v0  }
 0x502   : > { %4592 = vmatmul.mubr.msk.bf16.vlgmr.msra.gmra.mrb[0].mxu0 %vm2711_vm13, %v5438_v21 }
 0x503   : > { %4624 = vmatpush3.bf16.msra.mxu0 %v4853_v46  ;;  %4840 = vset.pattern.permute.xlu0 %v4975_v63 }
 0x504   : > { %4625 = vmatprep.subr.bf16.mxu0 %v4854_v47 }
 0x507   : > { %4626 = vmatpush3.bf16.msra.mxu0 %v4854_v47 }
 0x508   : > { %4631 = vmatprep.subr.bf16.mxu0 %v4973_v12 }
 0x55c   : > { %v3188_v14 = vpop.trf.xlu0 }
 0x578   : > { %v3245_v23 = vpop.permute.xlu1 %3244 }
 0x5ca   : > { %v2862_v27 = vpop.f32.mrb[0].mxu1 }
 0x5cb   : > { %v4601_v28 = vpop.f32.mrb[1].mxu1 }
 0x5cc   : > { %v2865_v29 = vpop.f32.mrb[2].mxu1 }
 0x5cd   : > { %v2870_v30 = vpack.c.bf16 %v2865_v29, %v2862_v27  ;;  %v4602_v31 = vpop.f32.mrb[3].mxu1 }
 0x5ce   : > { %v4859_v31 = vld [vmem:[%s5311_s28] sm:$0xff]  }
 0x5cf   : > { %4603 = vmatprep.subr.bf16.mxu1 %v2870_v30 }
 0x5d0   : > { %4604 = vmatpush3.bf16.msra.mxu1 %v2870_v30 }
 0x5d3   : > { %4606 = vmatmul.mubr.msk.bf16.vlgmr.msra.gmra.mrb[4].mxu1 %vm2881_vm14, %v4848_v32 }
 0x5d4   : > { %4611 = vmatprep.mubr.msk.bf16.mxu1 %vm2881_vm14, %v4849_v25 }
 0x5d5   : > { %v2805_v33 = vpop.f32.mrb[0].mxu0 }
 0x5d6   : > { %v4593_v34 = vpop.f32.mrb[1].mxu0 }
 0x5d7   : > { %v2808_v35 = vpop.f32.mrb[2].mxu0 }
 0x5d8   : > { %v2869_v36 = vpack.c.bf16 %v2808_v35, %v2805_v33  ;;  %v4594_v37 = vpop.f32.mrb[3].mxu0 }
 0x5d9   : > { %v4861_v37 = vld [vmem:[%s5316_s20] sm:$0xff]  }
 0x5da   : > { %4609 = vmatprep.subr.bf16.mxu1 %v2869_v36 }
 0x5db   : > { %4610 = vmatpush3.bf16.msra.mxu1 %v2869_v36 }
 0x5dc   : > { %4615 = vmatprep.subr.bf16.mxu1 %v4851_v38 }
 0x5df   : > { %4612 = vmatmul.mubr.msk.bf16.vlgmr.msra.gmra.mrb[4].mxu1 %vm2881_vm14, %v4850_v26  ;;  %v3250_v26 = vpop.permute.xlu1 %3249 }
 0x5e0   : > { %4616 = vmatpush3.bf16.msra.mxu1 %v4851_v38  ;;  %4619 = vmatprep.mubr.msk.bf16.mxu1 %vm2711_vm13, %v2678_v41  ;;  %v4862_v38 = vld [vmem:[%s5316_s20 + $0x8] sm:$0xff]   ;;  %s5718_s20 = scalar_lea.vmem %s5208_s13, %s5282_s0 }
 0x5e1   : > { %4617 = vmatprep.subr.bf16.mxu1 %v4852_v42 }
 0x5e4   : > { %4618 = vmatpush3.bf16.msra.mxu1 %v4852_v42 }
 0x5e5   : > { %4647 = vmatprep.subr.bf16.mxu1 %v4973_v12 }
 0x5eb   : > { %4620 = vmatmul.mubr.msk.bf16.vlgmr.msra.gmra.mrb[4].mxu1 %vm2711_vm13, %v2679_v45 }
 0x5ec   : > { %4651 = vmatprep.mubr.msk.bf16.mxu1 %vm4974_vm12, %v4973_v12  ;;  %4648 = vmatpush3.bf16.msra.mxu1 %v4856_v16 }
 0x5ed   : > { %4649 = vmatprep.subr.bf16.mxu1 %v4973_v12 }
 0x5f0   : > { %4650 = vmatpush3.bf16.msra.mxu1 %v4858_v22 }
 0x5f1   : > { %4663 = vmatprep.subr.bf16.mxu1 %v4973_v12 }
 0x5f3   : > { %4652 = vmatmul.mubr.msk.bf16.vlgmr.msra.gmra.mrb[8].mxu1 %vm2711_vm13, %v5438_v21  ;;  %v4860_v21 = vld [vmem:[%s5311_s28 + $0x8] sm:$0xff]   ;;  %s5717_s28 = scalar_lea.vmem %s5198_s17, %s5282_s0  ;;  %s5719_s0 = sld [smem:[#allocation16_spill]] (!%p4362_p5) }
 0x5f4   : > { %4667 = vmatprep.mubr.msk.bf16.mxu1 %vm4974_vm12, %v4973_v12  ;;  %4664 = vmatpush3.bf16.msra.mxu1 %v4861_v37  ;;  %v4357_v45 = vld [vmem:[%s5717_s28] ss:$0 sm:$0xff]  ;;  %s5727_s28 = sld [smem:[#allocation45_spill]] (!%p4362_p5) }
 0x5f5   : > { %4665 = vmatprep.subr.bf16.mxu1 %v4973_v12 }
 0x5f8   : > { %4666 = vmatpush3.bf16.msra.mxu1 %v4862_v38 }
 0x6be   : > { %v4621_v49 = vpop.f32.mrb[4].mxu1 }
 0x6bf   : > { %v3086_v50 = vadd.f32 %v4621_v49, %v4341_v48  ;;  %v3058_v51 = vpop.f32.mrb[5].mxu1 }
 0x6c0   : > { %v3084_v52 = vadd.f32 %v4341_v48, %v3058_v51  ;;  %v4622_v53 = vpop.f32.mrb[6].mxu1 }
 0x6c1   : > { %v3087_v54 = vadd.f32 %v4622_v53, %v4341_v48  ;;  %v3061_v55 = vpop.f32.mrb[7].mxu1  ;;  %v3090_v57 = vmax.f32 %v3086_v50, 0.0 }
 0x6c2   : > { %v3085_v56 = vadd.f32 %v4341_v48, %v3061_v55  ;;  %v3088_v59 = vmax.f32 %v3084_v52, 0.0  ;;  %v4358_v55 = vld [vmem:[%s5718_s20] ss:$0 sm:$0xff]  ;;  %s5728_s20 = sld [smem:[#allocation46_spill]] (!%p4362_p5) }
 0x6c3   : > { %v3091_v58 = vmax.f32 %v3087_v54, 0.0 }
 0x6c4   : > { %v3089_v60 = vmax.f32 %v3085_v56, 0.0 }
 0x6c5   : > { %v3093_v61 = vpack.c.bf16 %v3091_v58, %v3090_v57 }
 0x6c6   : > { %v3092_v2 = vpack.c.bf16 %v3089_v60, %v3088_v59  ;;  %v3365_v33 = vpop.f32.mrb[8].mxu1 }
 0x6c7   : > { %v4653_v34 = vpop.f32.mrb[9].mxu1 }
 0x6c8   : > { %4627 = vmatprep.mubr.msk.bf16.mxu0 %vm2711_vm13, %v3092_v2  ;;  %v3368_v35 = vpop.f32.mrb[10].mxu1  ;;  %v4873_v34 = vld [vmem:[%s5253_s19 + $0x8] sm:$0xff] (!%p4362_p5)  }
 0x6c9   : > { %4628 = vmatmul.mubr.msk.bf16.vlgmr.msra.gmra.mrb[4].mxu0 %vm2711_vm13, %v3093_v61  ;;  %v4654_v36 = vpop.f32.mrb[11].mxu1 }
 0x6ca   : > { %4635 = vmatprep.mubr.msk.bf16.mxu0 %vm4974_vm12, %v4973_v12 }
 0x79c   : > { %v4629_v3 = vpop.f32.mrb[4].mxu0 }
 0x79d   : > { %v3166_v4 = vadd.f32 %v4629_v3, %v4342_v1  ;;  %v3157_v5 = vpop.f32.mrb[5].mxu0  ;;  %v4978_v3 = vmov (!%p4362_p5), 0  }
 0x79e   : > { %v3158_v6 = vadd.f32 %v4342_v1, %v3157_v5  ;;  %v4630_v7 = vpop.f32.mrb[6].mxu0  ;;  %4863 = vset.pattern.permute.xlu0 (!%p4362_p5), %v4978_v3  ;;  %v4864_v5 = vld [vmem:[%s5722_s26] sm:$0xff] (!%p4362_p5)  }
 0x79f   : > { %3174 = vst.msk [vmem:[#allocation3 + $0x10] sm:$0xff] %vm2711_vm13, %v3166_v4  ;;  %v3169_v8 = vadd.f32 %v4630_v7, %v4342_v1  ;;  %v3160_v9 = vpop.f32.mrb[7].mxu0  ;;  %v4866_v7 = vld [vmem:[%s5722_s26 + $0x8] sm:$0xff] (!%p4362_p5)  }
 0x7a0   : > { %3172 = vst.msk [vmem:[#allocation3] sm:$0xff] %vm2711_vm13, %v3158_v6  ;;  %v3161_v10 = vadd.f32 %v4342_v1, %v3160_v9  ;;  %v3519_v1 = vld [vmem:[%s5719_s0] sm:$0x1] (!%p4362_p5)  ;;  %s5729_s0 = sld [smem:[#allocation47_spill]] (!%p4362_p5) }
 0x7a1   : > { %3175 = vst.msk [vmem:[#allocation3 + $0x18] sm:$0xff] %vm2711_vm13, %v3169_v8  ;;  %v3177_v11 = vpack.c.bf16 %v3169_v8, %v3166_v4  ;;  %v3564_v4 = vld [vmem:[%s5721_s23] sm:$0x3] (!%p4362_p5)  ;;  %v4867_v8 = vld [vmem:[%s5723_s4 + $0x8] sm:$0xff] (!%p4362_p5)  }
 0x7a2   : > { %3173 = vst.msk [vmem:[#allocation3 + $0x8] sm:$0xff] %vm2711_vm13, %v3161_v10  ;;  %v3176_v13 = vpack.c.bf16 %v3161_v10, %v3158_v6  ;;  %v4865_v6 = vld [vmem:[%s5723_s4] sm:$0xff] (!%p4362_p5)  }
 0x7a4   : > { %4632 = vmatpush3.bf16.msra.mxu0 %v3176_v13 }
 0x7a5   : > { %4633 = vmatprep.subr.bf16.mxu0 %v4973_v12 }
 0x7a8   : > { %4634 = vmatpush3.bf16.msra.mxu0 %v3177_v11 }
 0x7a9   : > { %4639 = vmatprep.subr.bf16.mxu0 %v4973_v12 }
 0x7ab   : > { %4636 = vmatmul.mubr.msk.bf16.vlgmr.msra.gmra.mrb[8].mxu0 %vm2711_vm13, %v3188_v14 }
 0x7ac   : > { %4643 = vmatprep.mubr.msk.bf16.mxu0 %vm4974_vm12, %v4973_v12  ;;  %4640 = vmatpush3.bf16.msra.mxu0 %v4855_v15 }
 0x7ad   : > { %4641 = vmatprep.subr.bf16.mxu0 %v4973_v12 }
 0x7b0   : > { %4642 = vmatpush3.bf16.msra.mxu0 %v4857_v17 }
 0x7b1   : > { %4655 = vmatprep.subr.bf16.mxu0 %v4973_v12 }
 0x87e   : > { %v5503_v24 = vpop.f32.mrb[8].mxu0 }
 0x87f   : > { %v4637_v25 = vpop.f32.mrb[9].mxu0  ;;  %v3252_v28 = vmul.f32 %v3245_v23, %v5503_v24 }
 0x880   : > { %v3236_v27 = vpop.f32.mrb[10].mxu0 }
 0x881   : > { %v3253_v29 = vmul.f32 %v3250_v26, %v3236_v27  ;;  %v4638_v30 = vpop.f32.mrb[11].mxu0  ;;  %v3571_v0 = vpack.c.bf16 (!%p4362_p5), %v3236_v27, %v5503_v24  ;;  %v4868_v24 = vld [vmem:[%s5724_s2] sm:$0xff] (!%p4362_p5)  }
 0x882   : > { %v3518_v30 = vld [vmem:[#allocation4] sm:$0x3] (!%p4362_p5) }
 0x883   : > { %v3258_v32 = vpack.c.bf16 %v3253_v29, %v3252_v28  ;;  %v4869_v29 = vld [vmem:[%s5724_s2 + $0x8] sm:$0xff] (!%p4362_p5)  }
 0x885   : > { %4644 = vmatmul.mubr.msk.bf16.vlgmr.msra.gmra.mrb[12].mxu0 %vm2711_vm13, %v3258_v32  ;;  %v4870_v32 = vld [vmem:[%s5725_s10] sm:$0xff] (!%p4362_p5)  }
 0x886   : > { %4656 = vmatpush3.bf16.msra.mxu0 %v4859_v31  ;;  %4659 = vmatprep.mubr.msk.bf16.mxu0 %vm4974_vm12, %v4973_v12  ;;  %v3739_v31 = vpack.c.bf16 (!%p4362_p5), %v3518_v30, %v3518_v30 }
 0x887   : > { %4657 = vmatprep.subr.bf16.mxu0 %v4973_v12 }
 0x88a   : > { %4658 = vmatpush3.bf16.msra.mxu0 %v4860_v21  ;;  %v4871_v21 = vld [vmem:[%s5725_s10 + $0x8] sm:$0xff] (!%p4362_p5)  }
 0x88d   : > { %4660 = vmatmul.mubr.msk.bf16.vlgmr.msra.gmra.mrb[16].mxu0 %vm2711_vm13, %v5432_v19 }
 0x958   : > { %v3312_v39 = vpop.f32.mrb[12].mxu0 }
 0x959   : > { %v4645_v40 = vpop.f32.mrb[13].mxu0  ;;  %v3366_v41 = vadd.f32 %v3365_v33, %v3312_v39  ;;  %v4872_v33 = vld [vmem:[%s5253_s19] sm:$0xff] (!%p4362_p5)  }
 0x95a   : > { %v3315_v42 = vpop.f32.mrb[14].mxu0 }
 0x95b   : > { %v4646_v43 = vpop.f32.mrb[15].mxu0  ;;  %v3369_v19 = vadd.f32 %v3368_v35, %v3315_v42 }
 0x960   : > { %v3422_v44 = vpop.f32.mrb[16].mxu0 }
 0x961   : > { %v3429_v46 = vadd.f32 %v3422_v44, %v3366_v41  ;;  %v4661_v47 = vpop.f32.mrb[17].mxu0  ;;  %v4374_v44 = vld [vmem:[%s5726_s15] ss:$0 sm:$0xff] (!%p4362_p5) }
 0x962   : > { %v3425_v48 = vpop.f32.mrb[18].mxu0 }
 0x963   : > { %v3438_v49 = vadd.f32 %v4357_v45, %v3429_v46  ;;  %v3430_v50 = vadd.f32 %v3425_v48, %v3369_v19  ;;  %v4662_v51 = vpop.f32.mrb[19].mxu0 }
 0x964   : > { %v4379_v51 = vld [vmem:[%s5727_s28] ss:$0 sm:$0xff] (!%p4362_p5) }
 0x965   : > { %v3439_v12 = vadd.f32 %v4357_v45, %v3430_v50  ;;  %v3440_v52 = vmax.f32 %v3438_v49, 0.0 }
 0x967   : > { %v3441_v53 = vmax.f32 %v3439_v12, 0.0  ;;  %v4874_v12 = vld [vmem:[%s5728_s20] sm:$0xff] (!%p4362_p5)  }
 0x969   : > { %v3442_v54 = vpack.c.bf16 %v3441_v53, %v3440_v52 }
 0x96b   : > { %4668 = vmatmul.mubr.msk.bf16.vlgmr.msra.gmra.mrb[12].mxu1 %vm2711_vm13, %v3442_v54 }
 0xa3e   : > { %v3503_v56 = vpop.f32.mrb[12].mxu1 }
 0xa3f   : > { %v3504_v57 = vadd.f32 %v4358_v55, %v3503_v56  ;;  %v4669_v58 = vpop.f32.mrb[13].mxu1  ;;  %3517 = sbr.rel (%p4362_p5) target bundleno = 3299 (0xce3), region = 248 }
 0xa40   : > { %v3506_v59 = vpop.f32.mrb[14].mxu1 }
 0xa41   : > { %v3510_v60 = vadd.f32 %v3504_v57, %v5430_v18  ;;  %v3507_v61 = vadd.f32 %v4358_v55, %v3506_v59  ;;  %v4670_v2 = vpop.f32.mrb[15].mxu1  ;;  %v4976_v18 = vmov (!%p4362_p5), 0.0   ;;  %v4875_v57 = vld [vmem:[%s5728_s20 + $0x8] sm:$0xff] (!%p4362_p5)  }
 0xa42   : > { %4671 = vmatprep.subr.bf16.mxu0 (!%p4362_p5), %v4976_v18  ;;  %4677 = vmatprep.subr.bf16.mxu1 (!%p4362_p5), %v4976_v18 }
 0xa43   : > { %3512 = vst.msk [vmem:[#allocation2] sm:$0xff] %vm2711_vm13, %v3510_v60  ;;  %v3511_v62 = vadd.f32 %v3507_v61, %v5434_v20  ;;  %v3612_v20 = vld [vmem:[%s5720_s18] sm:$0x3] (!%p4362_p5)  ;;  %4678 = vmatpush3.bf16.msra.mxu1 (!%p4362_p5), %v3571_v0  ;;  %4673 = vmatprep.mubr.msk.bf16.mxu0 (!%p4362_p5), %vm4977_vm15, %v4976_v18  ;;  %s5730_s18 = sld [smem:[#allocation52_spill]] (!%p4362_p5) }
 0xa44   : > { %4679 = vmatprep.mubr.msk.bf16.mxu1 (!%p4362_p5), %vm4977_vm15, %v4976_v18  ;;  %3615 = vperm.xlu0 (!%p4362_p5), %4863, %v3612_v20  }
 0xa45   : > { %3513 = vst.msk [vmem:[#allocation2 + $0x8] sm:$0xff] %vm2711_vm13, %v3511_v62  ;;  %v5529_v63 = vpack.c.bf16 (!%p4362_p5), %v3511_v62, %v3510_v60  ;;  %4691 = vmatprep.subr.bf16.mxu1 (!%p4362_p5), %v4976_v18  ;;  %v4375_v62 = vld [vmem:[%s5258_s9] ss:$0 sm:$0xff] (!%p4362_p5) }
 0xa46   : > { %4680 = vmatmul.mubr.msk.bf16.vlgmr.msra.gmra.mrb[0].mxu1 %vm2881_vm14, %v3519_v1 }
 0xa47   : > { %4672 = vmatpush3.bf16.msra.mxu0 %v5529_v63  ;;  %4692 = vmatpush3.bf16.msra.mxu1 %v4865_v6 }
 0xa48   : > { %4683 = vmatprep.subr.bf16.mxu0 %v4976_v18  ;;  %4693 = vmatprep.subr.bf16.mxu1 %v4976_v18 }
 0xa49   : > { %4695 = vmatprep.mubr.msk.bf16.mxu1 %vm4977_vm15, %v4976_v18  ;;  %3567 = vperm.xlu0 %4863, %v3564_v4   ;;  %v4383_v4 = vld [vmem:[%s5729_s0] ss:$0 sm:$0xff] }
 0xa4a   : > { %4674 = vmatmul.mubr.msk.bf16.vlgmr.msra.gmra.mrb[0].mxu0 %vm2881_vm14, %v3519_v1 }
 0xa4b   : > { %4684 = vmatpush3.bf16.msra.mxu0 %v4864_v5  ;;  %4687 = vmatprep.mubr.msk.bf16.mxu0 %vm4977_vm15, %v4976_v18 }
 0xa4c   : > { %4685 = vmatprep.subr.bf16.mxu0 %v4976_v18  ;;  %4694 = vmatpush3.bf16.msra.mxu1 %v4867_v8 }
 0xa4d   : > { %4707 = vmatprep.subr.bf16.mxu1 %v4976_v18 }
 0xa4f   : > { %4686 = vmatpush3.bf16.msra.mxu0 %v4866_v7 }
 0xa50   : > { %4699 = vmatprep.subr.bf16.mxu0 %v4976_v18 }
 0xac3   : > { %v3616_v9 = vpop.permute.xlu0 %3615 }
 0xac8   : > { %v3568_v10 = vpop.permute.xlu0 %3567 }
 0xb19   : > { %v3606_v13 = vpop.f32.mrb[0].mxu1 }
 0xb1a   : > { %v3618_v15 = vmul.f32 %v3616_v9, %v3606_v13  ;;  %v4681_v16 = vpop.f32.mrb[1].mxu1 }
 0xb1b   : > { %v3609_v22 = vpop.f32.mrb[2].mxu1 }
 0xb1c   : > { %v3624_v26 = vpack.c.bf16 %v3618_v15, %v3618_v15  ;;  %v4682_v27 = vpop.f32.mrb[3].mxu1 }
 0xb1d   : > { %v3558_v11 = vpop.f32.mrb[0].mxu0 }
 0xb1e   : > { %v3570_v14 = vmul.f32 %v3568_v10, %v3558_v11  ;;  %v4675_v17 = vpop.f32.mrb[1].mxu0  ;;  %4688 = vmatmul.mubr.msk.bf16.vlgmr.msra.gmra.mrb[4].mxu0 %vm2711_vm13, %v3624_v26 }
 0xb1f   : > { %v3561_v23 = vpop.f32.mrb[2].mxu0  ;;  %4700 = vmatpush3.bf16.msra.mxu0 %v4868_v24  ;;  %4703 = vmatprep.mubr.msk.bf16.mxu0 %vm4977_vm15, %v4976_v18 }
 0xb20   : > { %v3619_v25 = vpack.c.bf16 %v3570_v14, %v3570_v14  ;;  %v4676_v28 = vpop.f32.mrb[3].mxu0  ;;  %4701 = vmatprep.subr.bf16.mxu0 %v4976_v18 }
 0xb22   : > { %4696 = vmatmul.mubr.msk.bf16.vlgmr.msra.gmra.mrb[4].mxu1 %vm2711_vm13, %v3619_v25 }
 0xb23   : > { %4711 = vmatprep.mubr.msk.bf16.mxu1 %vm4977_vm15, %v4976_v18  ;;  %4702 = vmatpush3.bf16.msra.mxu0 %v4869_v29 }
 0xb24   : > { %4715 = vmatprep.subr.bf16.mxu0 %v4976_v18  ;;  %4708 = vmatpush3.bf16.msra.mxu1 %v4872_v33 }
 0xb25   : > { %4709 = vmatprep.subr.bf16.mxu1 %v4976_v18 }
 0xb26   : > { %4704 = vmatmul.mubr.msk.bf16.vlgmr.msra.gmra.mrb[8].mxu0 %vm2711_vm13, %v3739_v31 }
 0xb27   : > { %4716 = vmatpush3.bf16.msra.mxu0 %v4870_v32  ;;  %4719 = vmatprep.mubr.msk.bf16.mxu0 %vm4977_vm15, %v4976_v18 }
 0xb28   : > { %4717 = vmatprep.subr.bf16.mxu0 %v4976_v18  ;;  %4710 = vmatpush3.bf16.msra.mxu1 %v4873_v34 }
 0xb29   : > { %4723 = vmatprep.subr.bf16.mxu1 %v4976_v18 }
 0xb2b   : > { %4718 = vmatpush3.bf16.msra.mxu0 %v4871_v21 }
 0xb2e   : > { %4720 = vmatmul.mubr.msk.bf16.vlgmr.msra.gmra.mrb[12].mxu0 %vm2711_vm13, %v5529_v63 }
 0xbf1   : > { %v3678_v35 = vpop.f32.mrb[4].mxu0 }
 0xbf2   : > { %v4689_v38 = vpop.f32.mrb[5].mxu0 }
 0xbf3   : > { %v3681_v40 = vpop.f32.mrb[6].mxu0 }
 0xbf4   : > { %v4690_v42 = vpop.f32.mrb[7].mxu0 }
 0xbf5   : > { %v3733_v36 = vpop.f32.mrb[4].mxu1 }
 0xbf6   : > { %v3734_v37 = vadd.f32 %v3733_v36, %v3678_v35  ;;  %v4697_v39 = vpop.f32.mrb[5].mxu1 }
 0xbf7   : > { %v3736_v41 = vpop.f32.mrb[6].mxu1 }
 0xbf8   : > { %v4698_v43 = vpop.f32.mrb[7].mxu1 }
 0xbf9   : > { %v3793_v19 = vpop.f32.mrb[8].mxu0 }
 0xbfa   : > { %v3799_v45 = vadd.f32 %v3793_v19, %v3734_v37  ;;  %v4705_v46 = vpop.f32.mrb[9].mxu0 }
 0xbfb   : > { %v3796_v47 = vpop.f32.mrb[10].mxu0 }
 0xbfc   : > { %v3807_v48 = vadd.f32 %v4374_v44, %v3799_v45  ;;  %v4706_v49 = vpop.f32.mrb[11].mxu0 }
 0xbfe   : > { %v3808_v50 = vmax.f32 %v3807_v48, 0.0 }
 0xc00   : > { %v3809_v52 = vpack.c.bf16 %v3808_v50, %v3808_v50 }
 0xc01   : > { %v3938_v53 = vpop.f32.mrb[12].mxu0 }
 0xc02   : > { %v3939_v54 = vadd.f32 %v4379_v51, %v3938_v53  ;;  %4712 = vmatmul.mubr.msk.bf16.vlgmr.msra.gmra.mrb[8].mxu1 %vm2711_vm13, %v3809_v52  ;;  %v4721_v55 = vpop.f32.mrb[13].mxu0 }
 0xc03   : > { %4724 = vmatpush3.bf16.msra.mxu1 %v4874_v12  ;;  %v3941_v56 = vpop.f32.mrb[14].mxu0  ;;  %4727 = vmatprep.mubr.msk.bf16.mxu1 %vm4977_vm15, %v4976_v18 }
 0xc04   : > { %v3942_v58 = vadd.f32 %v4379_v51, %v3941_v56  ;;  %v4722_v59 = vpop.f32.mrb[15].mxu0  ;;  %4725 = vmatprep.subr.bf16.mxu1 %v4976_v18  ;;  %v3945_v60 = vmax.f32 %v3939_v54, 0.0 }
 0xc06   : > { %v3946_v61 = vmax.f32 %v3942_v58, 0.0 }
 0xc07   : > { %4726 = vmatpush3.bf16.msra.mxu1 %v4875_v57 }
 0xc08   : > { %v3947_v2 = vpack.c.bf16 %v3946_v61, %v3945_v60 }
 0xc0a   : > { %4728 = vmatmul.mubr.msk.bf16.vlgmr.msra.gmra.mrb[12].mxu1 %vm2711_vm13, %v3947_v2 }
 0xcd5   : > { %v3870_v63 = vpop.f32.mrb[8].mxu1 }
 0xcd6   : > { %v3871_v0 = vadd.f32 %v4375_v62, %v3870_v63  ;;  %v4713_v1 = vpop.f32.mrb[9].mxu1 }
 0xcd7   : > { %v3873_v20 = vpop.f32.mrb[10].mxu1 }
 0xcd8   : > { %3877 = vst.msk [vmem:[#allocation6] sm:$0x3] %vm3876_vm0, %v3871_v0  ;;  %v4714_v3 = vpop.f32.mrb[11].mxu1 }
 0xcdd   : > { %v4008_v5 = vpop.f32.mrb[12].mxu1 }
 0xcde   : > { %v4009_v18 = vadd.f32 %v4383_v4, %v4008_v5  ;;  %v4729_v6 = vpop.f32.mrb[13].mxu1 }
 0xcdf   : > { %v4011_v7 = vpop.f32.mrb[14].mxu1 }
 0xce0   : > { %4016 = vst.msk [vmem:[%s5730_s18] sm:$0xff] %vm4015_vm1, %v4009_v18  ;;  %v4012_v8 = vadd.f32 %v4383_v4, %v4011_v7  ;;  %v4730_v9 = vpop.f32.mrb[15].mxu1 }
 0xce2   : > { %4017 = vst.msk [vmem:[%s5730_s18 + $0x8] sm:$0xff] %vm4015_vm1, %v4012_v8 }
 0xce3 PF: > { %p4748_p6 = scmp.eq.s32.totalorder %s5276_s1, 1  ;;  %s4979_s23 = smov [#allocation6]  }
 0xce4   : > { %s4028_s15 = sshll.u32 %s4979_s23, 4  ;;  %s4029_s15 = int_to_ptr.vmem [resolvable:$true] %s4028_s15 }
 0xce5   : > { %s4876_s28 = scalar_lea.vmem %s4029_s15, 32  ;;  %p4883_p10 = scmp.lt.s32.totalorder %s4029_s15, %s4029_s15 }
 0xce6   : > { %p4877_p7 = scmp.ne.s32.totalorder %s4029_s15, %s4876_s28  ;;  %p4884_p11 = scmp.lt.s32.totalorder %s4876_s28, %s4876_s28 }
 0xce8   : > { %p4878_p8 = pnand %p4877_p7, %p4748_p6  ;;  %p4885_p12 = por %p4884_p11, %p4883_p10 }
 0xcea   : > { %p4879_p9 = pneg %p4878_p8 }
 0xcec   : > { %p4886_p13 = pnand %p4885_p12, %p4879_p9 }
 0xcee   : > { %4889 = shalt.err (!%p4886_p13)
}
 0xcef   : > { %s5731_s0 = sld [smem:[#allocation53_spill]] }
 0xcf5   : > { %s4890_s2 = scalar_lea.hbm %s5731_s0, 32 }
 0xcf6   : > { %p4891_p0 = scmp.ne.s32.totalorder %s5731_s0, %s4890_s2  ;;  %p4896_p3 = scmp.lt.u32.totalorder %s4890_s2, %s5731_s0 }
 0xcf8   : > { %p4892_p1 = pnand %p4891_p0, %p4748_p6 }
 0xcfa   : > { %p4893_p2 = pneg %p4892_p1 }
 0xcfc   : > { %p4898_p4 = pnand %p4896_p3, %p4893_p2 }
 0xcfe   : > { %4901 = shalt.err (!%p4898_p4)
}
 0xcff   : > { %4745 = dma.vmem_to_hbm [thread:$0]  (%p4748_p6), %s4029_s15, 32, %s5731_s0, [#allocation7]  }
 0xd00   : > { %4907 = dma.done.wait (%p4748_p6), [#allocation7], 32  }
 0xd01   : > { %4909 = vsyncadd (%p4748_p6), [#allocation7], 4294967264 }
 0xd02 PF: > { %s5732_s23 = sld [smem:[#allocation54_spill]] }
 0xd08   : > { %s125_s28 = sadd.s32 1, %s5732_s23  }
 0xd09   : > { %p122_p5 = scmp.ge.s32.totalorder %s125_s28, 4  }
 0xd0b   :  { %124 = sbr.rel (!%p122_p5) target bundleno = 116 (0x74), region = 375 }
 0xd12   :  { %4044 = vsyncpa [#allocation7], 1 }
 0xd13   :  { %4046 = vsyncpa [#allocation7 + $0x1], 1 }

</bundles_post_ra>
